<compile_context>
chip_gen: v5e
topology: v5e:2x2
jax: 0.10.0
libtpu: 0.0.40
codegen_flags: <defaults>
</compile_context>

<pallas_src>
import functools
import math

import jax
import jax.numpy as jnp
from jax import lax
from jax.experimental import pallas as pl
from jax.experimental.pallas import tpu as pltpu

_HIDDEN_PAD = 128        # pad hidden width 50 -> one full sublane/lane block
_LANE = 128              # batch now lives on the lane axis -> tiles are x128
_DEFAULT_TILE_B = 4096   # ~2.3 MiB of live intermediates per tile; far under VMEM


def _round_up(x, m):
    return ((x + m - 1) // m) * m


def _gelu_exact(x):
    # torch nn.GELU() default: exact erf formulation.
    return 0.5 * x * (1.0 + lax.erf(x * (1.0 / math.sqrt(2.0))))


def _gelu_tanh(x):
    # torch nn.GELU(approximate='tanh'): tanh runs on the EUP, off the VALU.
    c = math.sqrt(2.0 / math.pi)
    return 0.5 * x * (1.0 + jnp.tanh(c * (x + 0.044715 * x * x * x)))


def _critic_kernel(x_ref, w1_ref, b1_ref, w2_ref, b2_ref, w3_ref, b3_ref, o_ref,
                   *, gelu):
    x = x_ref[...]                                                      # (F, TB)
    h1 = jnp.dot(w1_ref[...], x, preferred_element_type=jnp.float32)   # MXU: (H, TB)
    h1 = gelu(h1 + b1_ref[...])                                         # VPU (+EUP)
    h2 = jnp.dot(w2_ref[...], h1, preferred_element_type=jnp.float32)  # MXU: (H, TB)
    h2 = gelu(h2 + b2_ref[...])
    # Final H -> 1 layer: VPU multiply + XLU sublane reduce (no N=1 MXU pass).
    out = jnp.sum(h2 * w3_ref[...], axis=0, keepdims=True) + b3_ref[...]  # (1, TB)
    o_ref[...] = out.astype(o_ref.dtype)


def prepare_params(params, hpad=_HIDDEN_PAD):
    """One-time: put params in kernel layout (batch-on-lanes) and zero-pad hidden 50->hpad.

    Incoming params are the natural (in_features, out_features) layout:
      w1:(F,H) b1:(H,) w2:(H,H) b2:(H,) w3:(H,1) b3:(1,)
    Returned layout:
      w1t:(hpad,F) b1c:(hpad,1) w2t:(hpad,hpad) b2c:(hpad,1) w3c:(hpad,1) b3s:(1,1)
    """
    w1, b1, w2, b2, w3, b3 = params
    f, h = w1.shape
    w1t = jnp.zeros((hpad, f), jnp.float32).at[:h, :].set(w1.T.astype(jnp.float32))
    b1c = jnp.zeros((hpad, 1), jnp.float32).at[:h, :].set(
        jnp.reshape(b1, (h, 1)).astype(jnp.float32))
    w2t = jnp.zeros((hpad, hpad), jnp.float32).at[:h, :h].set(w2.T.astype(jnp.float32))
    b2c = jnp.zeros((hpad, 1), jnp.float32).at[:h, :].set(
        jnp.reshape(b2, (h, 1)).astype(jnp.float32))
    w3c = jnp.zeros((hpad, 1), jnp.float32).at[:h, :].set(
        jnp.reshape(w3, (h, 1)).astype(jnp.float32))
    b3s = jnp.reshape(b3, (1, 1)).astype(jnp.float32)
    return (w1t, b1c, w2t, b2c, w3c, b3s)


@functools.partial(jax.jit, static_argnames=("tile_b", "approximate_gelu"))
def _forward(data, padded_params, *, tile_b, approximate_gelu):
    w1t, b1c, w2t, b2c, w3c, b3s = padded_params
    batch, feat = data.shape
    hpad = w1t.shape[0]

    # Batch tile: multiple of 128 (lane axis), capped at tile_b, and additionally
    # capped at ceil(batch/2) so the "parallel" grid has >= 2 steps when possible
    # (keeps both v7x TensorCores busy; no effect on single-TC v5e/v6e).
    tile_b = max(_LANE, _round_up(tile_b, _LANE))
    half = _round_up(pl.cdiv(batch, 2), _LANE)
    tb = min(tile_b, half)
    padded = _round_up(batch, tb)
    grid = (padded // tb,)

    # Batch-on-lanes layout: (feat, padded) input, (1, padded) output slab.
    xt = jnp.transpose(data.astype(jnp.float32))
    if padded != batch:
        xt = jnp.pad(xt, ((0, 0), (0, padded - batch)))

    def full(arr):
        # Whole-array block, constant index map -> fetched once, VMEM-resident.
        return pl.BlockSpec(arr.shape, lambda i: (0,) * arr.ndim)

    gelu = _gelu_tanh if approximate_gelu else _gelu_exact
    kernel = functools.partial(_critic_kernel, gelu=gelu)

    flops = 2 * padded * (feat * hpad + hpad * hpad + hpad)
    transcendentals = 2 * padded * hpad
    bytes_accessed = 4 * (padded * (feat + 1)
                          + hpad * feat + hpad * hpad + 3 * hpad + 1)

    out = pl.pallas_call(
        kernel,
        out_shape=jax.ShapeDtypeStruct((1, padded), jnp.float32),
        grid=grid,
        in_specs=[
            pl.BlockSpec((feat, tb), lambda i: (0, i)),   # streamed activations
            full(w1t), full(b1c), full(w2t), full(b2c), full(w3c), full(b3s),
        ],
        out_specs=pl.BlockSpec((1, tb), lambda i: (0, i)),
        compiler_params=pltpu.CompilerParams(
            dimension_semantics=("parallel",),            # 2x on v7x dual TCs
            vmem_limit_bytes=32 * 1024 * 1024,            # safe on v5e/v6e/v7x
        ),
        cost_estimate=pl.CostEstimate(
            flops=flops,
            transcendentals=transcendentals,
            bytes_accessed=bytes_accessed,
        ),
    )(xt, w1t, b1c, w2t, b2c, w3c, b3s)

    # (1, padded) -> (padded, 1) is a free row-major reshape; drop padded rows.
    return jnp.reshape(out, (padded, 1))[:batch]


def flexible_critic_net(data, padded_params, *, tile_b=_DEFAULT_TILE_B,
                        approximate_gelu=False):
    """data: (batch, x_len + a_len) -> (batch, 1) float32.

    `padded_params` must come from prepare_params(params) (done once at init).
    """
    return _forward(data, padded_params, tile_b=tile_b,
                    approximate_gelu=approximate_gelu)


def init_params(key, in_features, hidden=50, out_features=1):
    """Deterministic init mimicking PyTorch nn.Linear default
    (U[-1/sqrt(fan_in), 1/sqrt(fan_in)]); weights stored as (in, out)."""
    keys = jax.random.split(key, 6)

    def lin(kw, kb, fan_in, fan_out):
        bound = 1.0 / math.sqrt(fan_in)
        w = jax.random.uniform(kw, (fan_in, fan_out), jnp.float32, -bound, bound)
        b = jax.random.uniform(kb, (fan_out,), jnp.float32, -bound, bound)
        return w, b

    w1, b1 = lin(keys[0], keys[1], in_features, hidden)
    w2, b2 = lin(keys[2], keys[3], hidden, hidden)
    w3, b3 = lin(keys[4], keys[5], hidden, out_features)
    return (w1, b1, w2, b2, w3, b3)


def reference_forward(data, params):
    w1, b1, w2, b2, w3, b3 = params
    h = _gelu_exact(data @ w1 + b1)
    h = _gelu_exact(h @ w2 + b2)
    return h @ w3 + b3


if __name__ == "__main__":
    # Shapes consistent with the module: x_len=4, a_len=4 (num_a unused in forward).
    x_len, a_len, num_a = 4, 4, 3
    in_features = x_len + a_len

    key = jax.random.PRNGKey(0)
    k_data, k_params, k_data2 = jax.random.split(key, 3)
    params = init_params(k_params, in_features)
    padded_params = jax.tree_util.tree_map(jax.block_until_ready,
                                           prepare_params(params))  # once, at init

    # Small demo batch (single grid step, heavy batch padding path).
    batch = 8
    data = jax.random.normal(k_data, (batch, in_features), jnp.float32)
    out = jax.block_until_ready(flexible_critic_net(data, padded_params))
    ref = reference_forward(data, params)
    assert out.shape == (batch, 1)
    assert jnp.allclose(out, ref, atol=1e-5, rtol=1e-5), "mismatch vs reference (batch=8)"

    # Exercise the multi-step grid (batch not a tile multiple, 2 parallel steps).
    batch2 = 300
    data2 = jax.random.normal(k_data2, (batch2, in_features), jnp.float32)
    out2 = jax.block_until_ready(flexible_critic_net(data2, padded_params))
    ref2 = reference_forward(data2, params)
    assert out2.shape == (batch2, 1)
    assert jnp.allclose(out2, ref2, atol=1e-5, rtol=1e-5), "mismatch vs reference (batch=300)"

    # Optional fast path (tanh GELU on the EUP) — trades exactness for speed.
    out3 = jax.block_until_ready(
        flexible_critic_net(data2, padded_params, approximate_gelu=True))
    assert out3.shape == (batch2, 1)
    assert bool(jnp.all(jnp.isfinite(out3)))
    assert jnp.allclose(out3, ref2, atol=5e-2), "tanh-GELU path diverged unexpectedly"

    print("KERNEL_OK")
</pallas_src>

<mosaic_0001>
module attributes {stable_mosaic.version = 11 : i64} {
  func.func @_critic_kernel(%arg0: i32, %arg1: memref<8x128xf32, #tpu.memory_space<vmem>>, %arg2: memref<128x8xf32, #tpu.memory_space<vmem>>, %arg3: memref<128x1xf32, #tpu.memory_space<vmem>>, %arg4: memref<128x128xf32, #tpu.memory_space<vmem>>, %arg5: memref<128x1xf32, #tpu.memory_space<vmem>>, %arg6: memref<128x1xf32, #tpu.memory_space<vmem>>, %arg7: memref<1x1xf32, #tpu.memory_space<vmem>>, %arg8: memref<1x128xf32, #tpu.memory_space<vmem>>) attributes {dimension_semantics = [#tpu.dimension_semantics<parallel>], iteration_bounds = array<i64: 1>, scalar_prefetch = 0 : i64, scratch_operands = 0 : i64, tpu.core_type = #tpu.core_type<tc>, window_params = [{transform_indices = @transform_0, window_bounds = array<i64: 8, 128>}, {pipeline_mode = #tpu.pipeline_mode<synchronous>, transform_indices = @transform_1, window_bounds = array<i64: 128, 8>}, {pipeline_mode = #tpu.pipeline_mode<synchronous>, transform_indices = @transform_2, window_bounds = array<i64: 128, 1>}, {pipeline_mode = #tpu.pipeline_mode<synchronous>, transform_indices = @transform_3, window_bounds = array<i64: 128, 128>}, {pipeline_mode = #tpu.pipeline_mode<synchronous>, transform_indices = @transform_4, window_bounds = array<i64: 128, 1>}, {pipeline_mode = #tpu.pipeline_mode<synchronous>, transform_indices = @transform_5, window_bounds = array<i64: 128, 1>}, {pipeline_mode = #tpu.pipeline_mode<synchronous>, transform_indices = @transform_6, window_bounds = array<i64: 1, 1>}, {transform_indices = @transform_7, window_bounds = array<i64: 1, 128>}]} {
    %c0 = arith.constant 0 : index
    %c0_0 = arith.constant 0 : index
    %0 = vector.load %arg1[%c0, %c0_0] : memref<8x128xf32, #tpu.memory_space<vmem>>, vector<8x128xf32>
    %c0_1 = arith.constant 0 : index
    %c0_2 = arith.constant 0 : index
    %1 = vector.load %arg2[%c0_1, %c0_2] : memref<128x8xf32, #tpu.memory_space<vmem>>, vector<128x8xf32>
    %cst = arith.constant dense<0.000000e+00> : vector<128x128xf32>
    %2 = tpu.matmul %1, %0, %cst {dimension_numbers = #tpu.dot_dimension_numbers<[1], [0], [0], [1], [0, 0, 1, 1], [], []>} : vector<128x8xf32>, vector<8x128xf32>, vector<128x128xf32> -> vector<128x128xf32>
    %c0_3 = arith.constant 0 : index
    %c0_4 = arith.constant 0 : index
    %3 = vector.load %arg3[%c0_3, %c0_4] : memref<128x1xf32, #tpu.memory_space<vmem>>, vector<128x1xf32>
    %4 = vector.broadcast %3 : vector<128x1xf32> to vector<128x128xf32>
    %5 = arith.addf %2, %4 : vector<128x128xf32>
    %cst_5 = arith.constant 5.000000e-01 : f32
    %6 = vector.broadcast %cst_5 : f32 to vector<128x128xf32>
    %7 = arith.mulf %6, %5 : vector<128x128xf32>
    %cst_6 = arith.constant 0.707106769 : f32
    %8 = vector.broadcast %cst_6 : f32 to vector<128x128xf32>
    %9 = arith.mulf %5, %8 : vector<128x128xf32>
    %10 = math.erf %9 : vector<128x128xf32>
    %cst_7 = arith.constant 1.000000e+00 : f32
    %11 = vector.broadcast %cst_7 : f32 to vector<128x128xf32>
    %12 = arith.addf %11, %10 : vector<128x128xf32>
    %13 = arith.mulf %7, %12 : vector<128x128xf32>
    %c0_8 = arith.constant 0 : index
    %c0_9 = arith.constant 0 : index
    %14 = vector.load %arg4[%c0_8, %c0_9] : memref<128x128xf32, #tpu.memory_space<vmem>>, vector<128x128xf32>
    %cst_10 = arith.constant dense<0.000000e+00> : vector<128x128xf32>
    %15 = tpu.matmul %14, %13, %cst_10 {dimension_numbers = #tpu.dot_dimension_numbers<[1], [0], [0], [1], [0, 0, 1, 1], [], []>} : vector<128x128xf32>, vector<128x128xf32>, vector<128x128xf32> -> vector<128x128xf32>
    %c0_11 = arith.constant 0 : index
    %c0_12 = arith.constant 0 : index
    %16 = vector.load %arg5[%c0_11, %c0_12] : memref<128x1xf32, #tpu.memory_space<vmem>>, vector<128x1xf32>
    %17 = vector.broadcast %16 : vector<128x1xf32> to vector<128x128xf32>
    %18 = arith.addf %15, %17 : vector<128x128xf32>
    %cst_13 = arith.constant 5.000000e-01 : f32
    %19 = vector.broadcast %cst_13 : f32 to vector<128x128xf32>
    %20 = arith.mulf %19, %18 : vector<128x128xf32>
    %cst_14 = arith.constant 0.707106769 : f32
    %21 = vector.broadcast %cst_14 : f32 to vector<128x128xf32>
    %22 = arith.mulf %18, %21 : vector<128x128xf32>
    %23 = math.erf %22 : vector<128x128xf32>
    %cst_15 = arith.constant 1.000000e+00 : f32
    %24 = vector.broadcast %cst_15 : f32 to vector<128x128xf32>
    %25 = arith.addf %24, %23 : vector<128x128xf32>
    %26 = arith.mulf %20, %25 : vector<128x128xf32>
    %c0_16 = arith.constant 0 : index
    %c0_17 = arith.constant 0 : index
    %27 = vector.load %arg6[%c0_16, %c0_17] : memref<128x1xf32, #tpu.memory_space<vmem>>, vector<128x1xf32>
    %28 = vector.broadcast %27 : vector<128x1xf32> to vector<128x128xf32>
    %29 = arith.mulf %26, %28 : vector<128x128xf32>
    %cst_18 = arith.constant dense<0.000000e+00> : vector<128xf32>
    %30 = vector.multi_reduction <add>, %29, %cst_18 [0] : vector<128x128xf32> to vector<128xf32>
    %31 = vector.shape_cast %30 : vector<128xf32> to vector<1x128xf32>
    %c0_19 = arith.constant 0 : index
    %c0_20 = arith.constant 0 : index
    %32 = vector.load %arg7[%c0_19, %c0_20] : memref<1x1xf32, #tpu.memory_space<vmem>>, vector<1x1xf32>
    %33 = vector.broadcast %32 : vector<1x1xf32> to vector<1x128xf32>
    %34 = arith.addf %31, %33 : vector<1x128xf32>
    %c0_21 = arith.constant 0 : index
    %c0_22 = arith.constant 0 : index
    %35 = vector.load %arg8[%c0_21, %c0_22] : memref<1x128xf32, #tpu.memory_space<vmem>>, vector<1x128xf32>
    tpu.vector_store %arg8[%c0_21, %c0_22], %34 {strides = array<i32>} : memref<1x128xf32, #tpu.memory_space<vmem>>, vector<1x128xf32>,
    return
  }
  func.func @transform_0(%arg0: i32) -> (i32, i32) {
    %c0_i32 = arith.constant 0 : i32
    %c0_i32_0 = arith.constant 0 : i32
    return %c0_i32, %arg0 : i32, i32
  }
  func.func @transform_1(%arg0: i32) -> (i32, i32) {
    %c0_i32 = arith.constant 0 : i32
    %c0_i32_0 = arith.constant 0 : i32
    %c0_i32_1 = arith.constant 0 : i32
    return %c0_i32, %c0_i32_0 : i32, i32
  }
  func.func @transform_2(%arg0: i32) -> (i32, i32) {
    %c0_i32 = arith.constant 0 : i32
    %c0_i32_0 = arith.constant 0 : i32
    %c0_i32_1 = arith.constant 0 : i32
    return %c0_i32, %c0_i32_0 : i32, i32
  }
  func.func @transform_3(%arg0: i32) -> (i32, i32) {
    %c0_i32 = arith.constant 0 : i32
    %c0_i32_0 = arith.constant 0 : i32
    %c0_i32_1 = arith.constant 0 : i32
    return %c0_i32, %c0_i32_0 : i32, i32
  }
  func.func @transform_4(%arg0: i32) -> (i32, i32) {
    %c0_i32 = arith.constant 0 : i32
    %c0_i32_0 = arith.constant 0 : i32
    %c0_i32_1 = arith.constant 0 : i32
    return %c0_i32, %c0_i32_0 : i32, i32
  }
  func.func @transform_5(%arg0: i32) -> (i32, i32) {
    %c0_i32 = arith.constant 0 : i32
    %c0_i32_0 = arith.constant 0 : i32
    %c0_i32_1 = arith.constant 0 : i32
    return %c0_i32, %c0_i32_0 : i32, i32
  }
  func.func @transform_6(%arg0: i32) -> (i32, i32) {
    %c0_i32 = arith.constant 0 : i32
    %c0_i32_0 = arith.constant 0 : i32
    %c0_i32_1 = arith.constant 0 : i32
    return %c0_i32, %c0_i32_0 : i32, i32
  }
  func.func @transform_7(%arg0: i32) -> (i32, i32) {
    %c0_i32 = arith.constant 0 : i32
    %c0_i32_0 = arith.constant 0 : i32
    return %c0_i32, %arg0 : i32, i32
  }
}

</mosaic_0001>

<bundles_post_ra>
// kernel: _forward.1
= control target key start
LH: loop header
LB: loop body
LE: loop exit
PB: predicated region body
PF: predicated region fallthrough
CT: control target
= control target key end

     0   :  { %v2135_v0 = vmov 0   ;;  %vm141_vm0 = vcmask 64512   ;;  %s4085_s2 = inlined_call_operand.vmem [shape: f32[128,1], index: 2, kind: input, shape index: {}]   ;;  %s4086_s0 = inlined_call_operand.vmem [shape: f32[8,128], index: 0, kind: input, shape index: {}]   ;;  %s4087_s1 = inlined_call_operand.vmem [shape: f32[128,8], index: 1, kind: input, shape index: {}]   ;;  %s4088_s4 = inlined_call_operand.vmem [shape: f32[128,1], index: 4, kind: input, shape index: {}]   ;;  %s4089_s5 = inlined_call_operand.vmem [shape: f32[128,1], index: 5, kind: input, shape index: {}]   ;;  %s4090_s6 = inlined_call_operand.<no memory space> [shape: f32[1,1], index: 6, kind: input, shape index: {}]   ;;  %s4091_s3 = inlined_call_operand.vmem [shape: f32[128,128], index: 3, kind: input, shape index: {}]   ;;  %s4092_s7 = inlined_call_operand.vmem [shape: f32[1,128], index: 7, kind: output, shape index: {}]  }
   0x1   :  { %2070 = vset.pattern.permute.xlu2 %v2135_v0  ;;  %2069 = vset.pattern.permute.xlu1 %v2135_v0  ;;  %v60_v1 = vld [vmem:[%s4085_s2 + $0x78] sm:$0xff]  ;;  %v58_v2 = vld [vmem:[%s4085_s2 + $0x68] sm:$0xff]  ;;  %v28_v4 = vld [vmem:[%s4086_s0] sm:$0xff]  ;;  %v12_v54 = vstv %s4090_s6 }
   0x2   :  { %v56_v3 = vld [vmem:[%s4085_s2 + $0x58] sm:$0xff]  ;;  %2068 = vset.pattern.permute.xlu0 %v2135_v0  ;;  %128 = vperm.xlu1 %2069, %v58_v2   ;;  %v29_v5 = vld [vmem:[%s4087_s1] sm:$0xff]  ;;  %v39_v6 = vld [vmem:[%s4087_s1 + $0x50] sm:$0xff]  ;;  %13 = vst [vmem:[#allocation2] sm:$0x1] %v12_v54 }
   0x3   :  { %138 = vperm.xlu0 %2068, %v60_v1   ;;  %118 = vperm.xlu2 %2070, %v56_v3   ;;  %v57_v7 = vld [vmem:[%s4085_s2 + $0x60] sm:$0xff]  ;;  %v59_v8 = vld [vmem:[%s4085_s2 + $0x70] sm:$0xff]  ;;  %v30_v10 = vld [vmem:[%s4087_s1 + $0x8] sm:$0xff] }
   0x4   :  { %205 = vmatpush.msra.mxu0 %v28_v4  ;;  %2034 = vmatpush.msra.mxu3 %v28_v4  ;;  %v55_v9 = vld [vmem:[%s4085_s2 + $0x50] sm:$0xff]  ;;  %v40_v11 = vld [vmem:[%s4087_s1 + $0x58] sm:$0xff]  ;;  %v53_v12 = vld [vmem:[%s4085_s2 + $0x40] sm:$0xff] }
   0x5   :  { %1986 = vmatmul.msk.f32.vlgmr.msra.gmra.mxu0 %vm141_vm0, %v29_v5  ;;  %1996 = vmatmul.msk.f32.vlgmr.msra.gmra.mxu3 %vm141_vm0, %v39_v6  ;;  %v54_v13 = vld [vmem:[%s4085_s2 + $0x48] sm:$0xff]  ;;  %v52_v14 = vld [vmem:[%s4085_s2 + $0x38] sm:$0xff]  ;;  %v31_v15 = vld [vmem:[%s4087_s1 + $0x10] sm:$0xff] }
   0x6   :  { %v41_v16 = vld [vmem:[%s4087_s1 + $0x60] sm:$0xff]  ;;  %v50_v17 = vld [vmem:[%s4085_s2 + $0x28] sm:$0xff]  ;;  %v51_v18 = vld [vmem:[%s4085_s2 + $0x30] sm:$0xff] }
   0x7   :  { %v49_v19 = vld [vmem:[%s4085_s2 + $0x20] sm:$0xff]  ;;  %v32_v20 = vld [vmem:[%s4087_s1 + $0x18] sm:$0xff]  ;;  %v42_v21 = vld [vmem:[%s4087_s1 + $0x68] sm:$0xff] }
   0x8   :  { %v47_v22 = vld [vmem:[%s4085_s2 + $0x10] sm:$0xff]  ;;  %v48_v23 = vld [vmem:[%s4085_s2 + $0x18] sm:$0xff]  ;;  %v46_v24 = vld [vmem:[%s4085_s2 + $0x8] sm:$0xff] }
   0x9   :  { %v33_v25 = vld [vmem:[%s4087_s1 + $0x20] sm:$0xff]  ;;  %v43_v26 = vld [vmem:[%s4087_s1 + $0x70] sm:$0xff]  ;;  %v976_v28 = vld [vmem:[%s4088_s4 + $0x8] sm:$0xff] }
   0xa   :  { %123 = vperm.xlu1 %2069, %v57_v7   ;;  %v975_v27 = vld [vmem:[%s4088_s4] sm:$0xff]  ;;  %v34_v30 = vld [vmem:[%s4087_s1 + $0x28] sm:$0xff]  ;;  %v44_v31 = vld [vmem:[%s4087_s1 + $0x78] sm:$0xff] }
   0xb   :  { %133 = vperm.xlu0 %2068, %v59_v8   ;;  %113 = vperm.xlu2 %2070, %v55_v9   ;;  %v45_v29 = vld [vmem:[%s4085_s2] sm:$0xff]  ;;  %v978_v32 = vld [vmem:[%s4088_s4 + $0x18] sm:$0xff]  ;;  %v977_v34 = vld [vmem:[%s4088_s4 + $0x10] sm:$0xff] }
   0xc   :  { %v979_v33 = vld [vmem:[%s4088_s4 + $0x20] sm:$0xff]  ;;  %v35_v35 = vld [vmem:[%s4087_s1 + $0x30] sm:$0xff]  ;;  %v982_v37 = vld [vmem:[%s4088_s4 + $0x38] sm:$0xff] }
   0xd   :  { %1987 = vmatmul.msk.f32.gmra.mxu0 %vm141_vm0, %v30_v10  ;;  %1997 = vmatmul.msk.f32.gmra.mxu3 %vm141_vm0, %v40_v11  ;;  %v981_v36 = vld [vmem:[%s4088_s4 + $0x30] sm:$0xff]  ;;  %v980_v38 = vld [vmem:[%s4088_s4 + $0x28] sm:$0xff]  ;;  %v36_v39 = vld [vmem:[%s4087_s1 + $0x38] sm:$0xff] }
   0xe   :  { %v984_v40 = vld [vmem:[%s4088_s4 + $0x48] sm:$0xff]  ;;  %v985_v41 = vld [vmem:[%s4088_s4 + $0x50] sm:$0xff]  ;;  %v983_v42 = vld [vmem:[%s4088_s4 + $0x40] sm:$0xff] }
   0xf   :  { %v37_v43 = vld [vmem:[%s4087_s1 + $0x40] sm:$0xff]  ;;  %v988_v45 = vld [vmem:[%s4088_s4 + $0x68] sm:$0xff]  ;;  %v986_v46 = vld [vmem:[%s4088_s4 + $0x58] sm:$0xff] }
  0x10   :  { %v987_v44 = vld [vmem:[%s4088_s4 + $0x60] sm:$0xff]  ;;  %v38_v47 = vld [vmem:[%s4087_s1 + $0x48] sm:$0xff]  ;;  %v990_v48 = vld [vmem:[%s4088_s4 + $0x78] sm:$0xff] }
  0x11   :  { %v1840_v49 = vld [vmem:[%s4089_s5] sm:$0xff]  ;;  %v989_v50 = vld [vmem:[%s4088_s4 + $0x70] sm:$0xff]  ;;  %v1843_v52 = vld [vmem:[%s4089_s5 + $0x18] sm:$0xff] }
  0x12   :  { %103 = vperm.xlu1 %2069, %v53_v12   ;;  %v1842_v51 = vld [vmem:[%s4089_s5 + $0x10] sm:$0xff]  ;;  %v1841_v53 = vld [vmem:[%s4089_s5 + $0x8] sm:$0xff]  ;;  %v1844_v57 = vld [vmem:[%s4089_s5 + $0x20] sm:$0xff] }
  0x13   :  { %108 = vperm.xlu0 %2068, %v54_v13   ;;  %98 = vperm.xlu2 %2070, %v52_v14   ;;  %v1845_v55 = vld [vmem:[%s4089_s5 + $0x28] sm:$0xff]  ;;  %v1846_v56 = vld [vmem:[%s4089_s5 + $0x30] sm:$0xff]  ;;  %v1848_v59 = vld [vmem:[%s4089_s5 + $0x40] sm:$0xff] }
  0x14   :  { %v1849_v60 = vld [vmem:[%s4089_s5 + $0x48] sm:$0xff]  ;;  %v1847_v61 = vld [vmem:[%s4089_s5 + $0x38] sm:$0xff]  ;;  %v1852_v0 = vld [vmem:[%s4089_s5 + $0x60] sm:$0xff] }
  0x15   :  { %1988 = vmatmul.msk.f32.gmra.mxu0 %vm141_vm0, %v31_v15  ;;  %1998 = vmatmul.msk.f32.gmra.mxu3 %vm141_vm0, %v41_v16  ;;  %v1851_v63 = vld [vmem:[%s4089_s5 + $0x58] sm:$0xff]  ;;  %v1850_v1 = vld [vmem:[%s4089_s5 + $0x50] sm:$0xff]  ;;  %v1853_v5 = vld [vmem:[%s4089_s5 + $0x68] sm:$0xff] }
  0x16   :  { %v1854_v3 = vld [vmem:[%s4089_s5 + $0x70] sm:$0xff]  ;;  %v1855_v4 = vld [vmem:[%s4089_s5 + $0x78] sm:$0xff]  ;;  %v1973_v8 = vld [vmem:[#allocation2] sm:$0x1] }
  0x1a   :  { %88 = vperm.xlu1 %2069, %v50_v17  }
  0x1b   :  { %93 = vperm.xlu0 %2068, %v51_v18   ;;  %83 = vperm.xlu2 %2070, %v49_v19  }
  0x1d   :  { %1989 = vmatmul.msk.f32.gmra.mxu0 %vm141_vm0, %v32_v20  ;;  %1999 = vmatmul.msk.f32.gmra.mxu3 %vm141_vm0, %v42_v21 }
  0x22   :  { %73 = vperm.xlu1 %2069, %v47_v22  }
  0x23   :  { %78 = vperm.xlu0 %2068, %v48_v23   ;;  %68 = vperm.xlu2 %2070, %v46_v24  }
  0x25   :  { %1990 = vmatmul.msk.f32.gmra.mxu0 %vm141_vm0, %v33_v25  ;;  %2000 = vmatmul.msk.f32.gmra.mxu3 %vm141_vm0, %v43_v26 }
  0x2a   :  { %993 = vperm.xlu1 %2069, %v975_v27  }
  0x2b   :  { %998 = vperm.xlu2 %2070, %v976_v28   ;;  %63 = vperm.xlu0 %2068, %v45_v29  }
  0x2d   :  { %1991 = vmatmul.msk.f32.gmra.mxu0 %vm141_vm0, %v34_v30  ;;  %2001 = vmatmul.msk.f32.gmra.mxu3 %vm141_vm0, %v44_v31 }
  0x32   :  { %1008 = vperm.xlu1 %2069, %v978_v32  }
  0x33   :  { %1013 = vperm.xlu2 %2070, %v979_v33   ;;  %1003 = vperm.xlu0 %2068, %v977_v34  }
  0x35   :  { %1992 = vmatmul.msk.f32.gmra.mxu0 %vm141_vm0, %v35_v35 }
  0x3a   :  { %1023 = vperm.xlu1 %2069, %v981_v36  }
  0x3b   :  { %1028 = vperm.xlu2 %2070, %v982_v37   ;;  %1018 = vperm.xlu0 %2068, %v980_v38  }
  0x3d   :  { %1993 = vmatmul.msk.f32.gmra.mxu0 %vm141_vm0, %v36_v39 }
  0x42   :  { %1038 = vperm.xlu1 %2069, %v984_v40  }
  0x43   :  { %1043 = vperm.xlu2 %2070, %v985_v41   ;;  %1033 = vperm.xlu0 %2068, %v983_v42  }
  0x45   :  { %1994 = vmatmul.msk.f32.gmra.mxu0 %vm141_vm0, %v37_v43 }
  0x4a   :  { %1053 = vperm.xlu1 %2069, %v987_v44  }
  0x4b   :  { %1058 = vperm.xlu2 %2070, %v988_v45   ;;  %1048 = vperm.xlu0 %2068, %v986_v46  }
  0x4d   :  { %1995 = vmatmul.msk.f32.gmra.mxu0 %vm141_vm0, %v38_v47 }
  0x52   :  { %1068 = vperm.xlu1 %2069, %v990_v48  }
  0x53   :  { %1858 = vperm.xlu2 %2070, %v1840_v49   ;;  %1063 = vperm.xlu0 %2068, %v989_v50  }
  0x5a   :  { %1868 = vperm.xlu1 %2069, %v1842_v51  }
  0x5b   :  { %1873 = vperm.xlu2 %2070, %v1843_v52   ;;  %1863 = vperm.xlu0 %2068, %v1841_v53  }
  0x5d   :  { %v119_v58 = vpop.permute.xlu2 %118 }
  0x62   :  { %1883 = vperm.xlu1 %2069, %v1845_v55  }
  0x63   :  { %1888 = vperm.xlu2 %2070, %v1846_v56   ;;  %1878 = vperm.xlu0 %2068, %v1844_v57  }
  0x65   :  { %v114_v62 = vpop.permute.xlu2 %113 }
  0x6a   :  { %1898 = vperm.xlu1 %2069, %v1848_v59  }
  0x6b   :  { %1903 = vperm.xlu2 %2070, %v1849_v60   ;;  %1893 = vperm.xlu0 %2068, %v1847_v61  }
  0x6d   :  { %v2392_v6 = vpop.permute.xlu2 %98 }
  0x72   :  { %1913 = vperm.xlu1 %2069, %v1851_v63  }
  0x73   :  { %1918 = vperm.xlu2 %2070, %v1852_v0   ;;  %1908 = vperm.xlu0 %2068, %v1850_v1  }
  0x74   :  { %v2381_v2 = vpop.permute.xlu1 %128 }
  0x75   :  { %v2396_v10 = vpop.permute.xlu2 %83  ;;  %v2402_v15 = vpop.permute.xlu0 %138 }
  0x7a   :  { %1928 = vperm.xlu1 %2069, %v1854_v3  }
  0x7b   :  { %1933 = vperm.xlu2 %2070, %v1855_v4   ;;  %1923 = vperm.xlu0 %2068, %v1853_v5  }
  0x7c   :  { %v124_v7 = vpop.permute.xlu1 %123 }
  0x7d   :  { %v69_v18 = vpop.permute.xlu2 %68  ;;  %v2423_v28 = vpop.permute.xlu0 %133 }
  0x82   :  { %v2394_v9 = vpop.f32.mrf.mxu0 }
  0x83   :  { %1976 = vperm.xlu0 %2068, %v1973_v8  }
  0x84   :  { %v2398_v11 = vpop.permute.xlu1 %103 }
  0x85   :  { %v2446_v42 = vpop.permute.xlu0 %108 }
  0x88   :  { %v237_v12 = vpop.f32.mrf.mxu3 }
  0x89   :  { %v2400_v13 = vadd.f32 %v237_v12, %v114_v62 }
  0x8a   :  { %v210_v14 = vpop.f32.mrf.mxu0 }
  0x8b   :  { %v2405_v16 = vmul.f32 0.70710677, %v2400_v13  ;;  %v2411_v20 = vadd.f32 %v210_v14, %v69_v18 }
  0x8c   :  { %v2407_v17 = vpop.permute.xlu1 %88 }
  0x8d   :  { %v687_v19 = vmul.f32 %v2405_v16, %v2405_v16  ;;  %4115 = vst [vmem:[#allocation3_spill] sm:$0xff] %v2411_v20  ;;  %v2418_v24 = vmul.f32 0.70710677, %v2411_v20 }
  0x8f   :  { %v2415_v23 = vmin.f32 %v687_v19, 16.0  ;;  %4116 = vst [vmem:[#allocation4_spill] sm:$0xff] %v2418_v24  ;;  %v327_v31 = vmul.f32 %v2418_v24, %v2418_v24 }
  0x90   :  { %v240_v21 = vpop.f32.mrf.mxu3 }
  0x91   :  { %v2413_v22 = vadd.f32 %v240_v21, %v119_v58  ;;  %v700_v30 = vmul.f32 3.8918573e-05, %v2415_v23  ;;  %v2437_v36 = vmin.f32 %v327_v31, 16.0  ;;  %v689_v48 = vmul.f32 2.1237322e-06, %v2415_v23  ;;  %v2459_v58 = vpop.permute.xlu0 %93 }
  0x92   :  { %v213_v26 = vpop.f32.mrf.mxu0 }
  0x93   :  { %v2421_v25 = vmul.f32 0.70710677, %v2413_v22  ;;  %v701_v35 = vadd.f32 0.001143296, %v700_v30  ;;  %v340_v41 = vmul.f32 3.8918573e-05, %v2437_v36 }
  0x94   :  { %v74_v27 = vpop.permute.xlu1 %73  ;;  %v690_v54 = vadd.f32 0.00028619796, %v689_v48  ;;  %v329_v57 = vmul.f32 2.1237322e-06, %v2437_v36 }
  0x95   :  { %v2425_v29 = vadd.f32 %v213_v26, %v74_v27  ;;  %v727_v32 = vmul.f32 %v2421_v25, %v2421_v25  ;;  %v702_v40 = vmul.f32 %v701_v35, %v2415_v23  ;;  %v341_v47 = vadd.f32 0.001143296, %v340_v41 }
  0x96   :  { %v691_v62 = vmul.f32 %v690_v54, %v2415_v23  ;;  %v330_v1 = vadd.f32 0.00028619796, %v329_v57 }
  0x97   :  { %4117 = vst [vmem:[#allocation5_spill] sm:$0xff] %v2425_v29  ;;  %v2432_v33 = vmin.f32 %v727_v32, 16.0  ;;  %v2435_v34 = vmul.f32 0.70710677, %v2425_v29  ;;  %v703_v46 = vadd.f32 0.014752088, %v702_v40  ;;  %v342_v53 = vmul.f32 %v341_v47, %v2437_v36 }
  0x98   :  { %v243_v44 = vpop.f32.mrf.mxu3  ;;  %v692_v8 = vadd.f32 0.0036580483, %v691_v62  ;;  %v331_v18 = vmul.f32 %v330_v1, %v2437_v36 }
  0x99   :  { %v367_v37 = vmul.f32 %v2435_v34, %v2435_v34  ;;  %v740_v38 = vmul.f32 3.8918573e-05, %v2432_v33  ;;  %v2450_v49 = vadd.f32 %v243_v44, %v124_v7  ;;  %v704_v52 = vmul.f32 %v703_v46, %v2415_v23  ;;  %v79_v32 = vpop.permute.xlu0 %78 }
  0x9a   :  { %v343_v61 = vadd.f32 0.014752088, %v342_v53  ;;  %v729_v7 = vmul.f32 2.1237322e-06, %v2432_v33  ;;  %v216_v21 = vpop.f32.mrf.mxu0  ;;  %v693_v31 = vmul.f32 %v692_v8, %v2415_v23  ;;  %v332_v41 = vadd.f32 0.0036580483, %v331_v18 }
  0x9b   :  { %v2442_v39 = vmin.f32 %v367_v37, 16.0  ;;  %v741_v43 = vadd.f32 0.001143296, %v740_v38  ;;  %v2456_v55 = vmul.f32 0.70710677, %v2450_v49  ;;  %v2477_v40 = vadd.f32 %v216_v21, %v79_v32 }
  0x9c   :  { %v705_v60 = vadd.f32 0.112945676, %v704_v52  ;;  %v344_v5 = vmul.f32 %v343_v61, %v2437_v36  ;;  %v730_v30 = vadd.f32 0.00028619796, %v729_v7  ;;  %v694_v47 = vadd.f32 0.05243302, %v693_v31 }
  0x9d   :  { %v380_v45 = vmul.f32 3.8918573e-05, %v2442_v39  ;;  %v742_v50 = vmul.f32 %v741_v43, %v2432_v33  ;;  %v767_v63 = vmul.f32 %v2456_v55, %v2456_v55  ;;  %v369_v38 = vmul.f32 2.1237322e-06, %v2442_v39  ;;  %4118 = vst [vmem:[#allocation6_spill] sm:$0xff] %v2477_v40 }
  0x9e   :  { %v706_v4 = vmul.f32 %v705_v60, %v2415_v23  ;;  %v345_v27 = vadd.f32 0.112945676, %v344_v5  ;;  %v731_v46 = vmul.f32 %v730_v30, %v2432_v33  ;;  %v2483_v52 = vmul.f32 0.70710677, %v2477_v40 }
  0x9f   :  { %v381_v51 = vadd.f32 0.001143296, %v380_v45  ;;  %v743_v56 = vadd.f32 0.014752088, %v742_v50  ;;  %v2469_v12 = vmin.f32 %v767_v63, 16.0  ;;  %v333_v53 = vmul.f32 %v332_v41, %v2437_v36 }
  0xa0   :  { %v707_v26 = vadd.f32 0.4994258, %v706_v4  ;;  %v346_v45 = vmul.f32 %v345_v27, %v2437_v36  ;;  %v695_v61 = vmul.f32 %v694_v47, %v2415_v23  ;;  %v246_v1 = vpop.f32.mrf.mxu3 }
  0xa1   :  { %v382_v59 = vmul.f32 %v381_v51, %v2442_v39  ;;  %v744_v0 = vmul.f32 %v743_v56, %v2432_v33  ;;  %v780_v35 = vmul.f32 3.8918573e-05, %v2469_v12  ;;  %v370_v51 = vadd.f32 0.00028619796, %v369_v38 }
  0xa2   :  { %v708_v44 = vmul.f32 %v707_v26, %v2415_v23  ;;  %v347_v57 = vadd.f32 0.4994258, %v346_v45  ;;  %v696_v18 = vadd.f32 0.18741608, %v695_v61  ;;  %v769_v31 = vmul.f32 2.1237322e-06, %v2469_v12  ;;  %v64_v45 = vpop.permute.xlu0 %63 }
  0xa3   :  { %v383_v3 = vadd.f32 0.014752088, %v382_v59  ;;  %v745_v14 = vadd.f32 0.112945676, %v744_v0  ;;  %v781_v48 = vadd.f32 0.001143296, %v780_v35  ;;  %v371_v63 = vmul.f32 %v370_v51, %v2442_v39 }
  0xa4   :  { %v2487_v56 = vadd.f32 1.0, %v708_v44  ;;  %v732_v59 = vadd.f32 0.0036580483, %v731_v46  ;;  %v407_v0 = vmul.f32 %v2483_v52, %v2483_v52  ;;  %v348_v5 = vmul.f32 %v347_v57, %v2437_v36 }
  0xa5   :  { %v384_v19 = vmul.f32 %v383_v3, %v2442_v39  ;;  %v746_v37 = vmul.f32 %v745_v14, %v2432_v33  ;;  %v782_v60 = vmul.f32 %v781_v48, %v2469_v12  ;;  %v334_v3 = vadd.f32 0.05243302, %v333_v53 }
  0xa6   :  { %2071 = vrcp.f32 %v2487_v56  ;;  %v733_v7 = vmul.f32 %v732_v59, %v2432_v33  ;;  %v2499_v14 = vadd.f32 %v246_v1, %v2381_v2  ;;  %v372_v21 = vadd.f32 0.0036580483, %v371_v63 }
  0xa7   :  { %v385_v43 = vadd.f32 0.112945676, %v384_v19  ;;  %v747_v50 = vadd.f32 0.4994258, %v746_v37  ;;  %v783_v8 = vadd.f32 0.014752088, %v782_v60  ;;  %v335_v27 = vmul.f32 %v334_v3, %v2437_v36 }
  0xa8   :  { %v2503_v26 = vmin.f32 %v407_v0, 16.0  ;;  %v2508_v32 = vadd.f32 1.0, %v348_v5  ;;  %v734_v35 = vadd.f32 0.05243302, %v733_v7  ;;  %v2512_v2 = vmul.f32 0.70710677, %v2499_v14 }
  0xa9   :  { %v386_v54 = vmul.f32 %v385_v43, %v2442_v39  ;;  %v748_v62 = vmul.f32 %v747_v50, %v2432_v33  ;;  %v784_v37 = vmul.f32 %v783_v8, %v2469_v12  ;;  %v697_v41 = vmul.f32 %v696_v18, %v2415_v23 }
  0xaa   :  { %v373_v43 = vmul.f32 %v372_v21, %v2442_v39  ;;  %v420_v44 = vmul.f32 3.8918573e-05, %v2503_v26  ;;  %v336_v46 = vadd.f32 0.18741608, %v335_v27  ;;  %v770_v48 = vadd.f32 0.00028619796, %v769_v31 }
  0xab   :  { %v387_v4 = vadd.f32 0.4994258, %v386_v54  ;;  %v2501_v19 = vadd.f32 1.0, %v748_v62  ;;  %v2523_v50 = vmul.f32 0.5, %v2400_v13  ;;  %v735_v51 = vmul.f32 %v734_v35, %v2432_v33 }
  0xac   :  { %v2514_v38 = vpop.eup %2071  ;;  %v785_v53 = vadd.f32 0.112945676, %v784_v37  ;;  %v2530_v54 = vadd.f32 %v2394_v9, %v64_v45  ;;  %v807_v57 = vmul.f32 %v2512_v2, %v2512_v2  ;;  %v698_v59 = vadd.f32 1.1283791, %v697_v41 }
  0xad   :  { %v388_v30 = vmul.f32 %v387_v4, %v2442_v39  ;;  %2073 = vrcp.f32 %v2501_v19  ;;  %v711_v23 = vmul.f32 %v2514_v38, %v2487_v56  ;;  %v374_v60 = vadd.f32 0.05243302, %v373_v43 }
  0xae   :  { %2075 = vrcp.f32 %v2508_v32  ;;  %4119 = vst [vmem:[#allocation7_spill] sm:$0xff] %v2530_v54  ;;  %v421_v61 = vadd.f32 0.001143296, %v420_v44  ;;  %v337_v13 = vmul.f32 %v336_v46, %v2437_v36  ;;  %v2536_v62 = vmul.f32 0.5, %v2413_v22 }
  0xaf   :  { %v2520_v47 = vadd.f32 1.0, %v388_v30  ;;  %v771_v63 = vmul.f32 %v770_v48, %v2469_v12  ;;  %v721_v9 = vand.u32 2147483648, %v2487_v56  ;;  %v736_v1 = vadd.f32 0.18741608, %v735_v51 }
  0xb0   :  { %v409_v3 = vmul.f32 2.1237322e-06, %v2503_v26  ;;  %v2544_v4 = vmin.f32 %v807_v57, 16.0  ;;  %v712_v5 = vsub.f32 1.0, %v711_v23  ;;  %v2547_v7 = vmul.f32 0.5, %v2450_v49  ;;  %v219_v23 = vpop.f32.mrf.mxu0 }
  0xb1   :  { %2077 = vrcp.f32 %v2520_v47  ;;  %v786_v22 = vmul.f32 %v785_v53, %v2469_v12  ;;  %v2551_v36 = vmul.f32 0.70710677, %v2530_v54  ;;  %v2556_v18 = vmul.f32 %v698_v59, %v2405_v16 }
  0xb2   :  { %v375_v21 = vmul.f32 %v374_v60, %v2442_v39  ;;  %v422_v27 = vmul.f32 %v421_v61, %v2503_v26  ;;  %v820_v30 = vmul.f32 3.8918573e-05, %v2544_v4  ;;  %vm715_vm1 = vweird.f32 %v2487_v56 }
  0xb3   :  { %v2540_v0 = vpop.eup %2073  ;;  %4120 = vst [vmem:[#allocation8_spill] sm:$0xff] %v2551_v36  ;;  %v719_v49 = vand.u32 2147483647, %v2487_v56  ;;  %v772_v35 = vadd.f32 0.0036580483, %v771_v63  ;;  %v722_v37 = vor.u32 1.1754944e-38, %v721_v9  ;;  %v737_v16 = vmul.f32 %v736_v1, %v2432_v33 }
  0xb4   :  { %v2553_v8 = vpop.eup %2075  ;;  %v751_v31 = vmul.f32 %v2540_v0, %v2501_v19  ;;  %v2565_v41 = vadd.f32 1.1283791, %v337_v13  ;;  %v410_v43 = vadd.f32 0.00028619796, %v409_v3  ;;  %v713_v45 = vmul.f32 %v2514_v38, %v712_v5 }
  0xb5   :  { %4121 = vst [vmem:[#allocation9_spill] sm:$0xff] %v2553_v8  ;;  %v787_v46 = vadd.f32 0.4994258, %v786_v22  ;;  %v287_v48 = vmul.f32 %v2551_v36, %v2551_v36  ;;  %v821_v51 = vadd.f32 0.001143296, %v820_v30  ;;  %v351_v53 = vmul.f32 %v2553_v8, %v2508_v32 }
  0xb6   :  { %4122 = vst [vmem:[#allocation10_spill] sm:$0xff] %v2565_v41  ;;  %v361_v57 = vand.u32 2147483648, %v2508_v32  ;;  %v376_v59 = vadd.f32 0.18741608, %v375_v21  ;;  %v423_v60 = vadd.f32 0.014752088, %v422_v27  ;;  %vm716_vm2 = vweird.f32 %v2514_v38 }
  0xb7   :  { %v2568_v44 = vpop.eup %2077  ;;  %vm2577_vm3 = vcmp.eq.f32.partialorder %v719_v49, 8.507059e+37  ;;  %v752_v13 = vsub.f32 1.0, %v751_v31  ;;  %v773_v63 = vmul.f32 %v772_v35, %v2469_v12  ;;  %v738_v9 = vadd.f32 1.1283791, %v737_v16  ;;  %vm2606_vm5 = vmor %vm715_vm1, %vm716_vm2 }
  0xb8   :  { %v391_v1 = vmul.f32 %v2568_v44, %v2520_v47  ;;  %v411_v3 = vmul.f32 %v410_v43, %v2503_v26  ;;  %v2587_v5 = vadd.f32 %v219_v23, %v2396_v10  ;;  %v714_v22 = vadd.f32 %v2514_v38, %v713_v45 }
  0xb9   :  { %v788_v21 = vmul.f32 %v787_v46, %v2469_v12  ;;  %v2591_v27 = vmin.f32 %v287_v48, 16.0  ;;  %v822_v30 = vmul.f32 %v821_v51, %v2544_v4  ;;  %v352_v49 = vsub.f32 1.0, %v351_v53 }
  0xba   :  { %4125 = vst [vmem:[#allocation11_spill] sm:$0xff] %v2587_v5  ;;  %v2594_v31 = vor.u32 1.1754944e-38, %v361_v57  ;;  %v377_v35 = vmul.f32 %v376_v59, %v2442_v39  ;;  %v424_v16 = vmul.f32 %v423_v60, %v2503_v26  ;;  %vm356_vm4 = vweird.f32 %v2553_v8  ;;  %v249_v57 = vpop.f32.mrf.mxu3 }
  0xbb   :  { %4126 = vst [vmem:[#allocation12_spill] sm:$0xff] %v2591_v27  ;;  %v753_v10 = vmul.f32 %v2540_v0, %v752_v13  ;;  %v759_v43 = vand.u32 2147483647, %v2501_v19  ;;  %v761_v45 = vand.u32 2147483648, %v2501_v19  ;;  %v774_v46 = vadd.f32 0.05243302, %v773_v63 }
  0xbc   :  { %4127 = vst [vmem:[#allocation13_spill] sm:$0xff] %v2594_v31  ;;  %v2611_v39 = vmul.f32 %v738_v9, %v2421_v25  ;;  %v392_v51 = vsub.f32 1.0, %v391_v1  ;;  %v412_v23 = vadd.f32 0.0036580483, %v411_v3  ;;  %v2614_v53 = vmul.f32 0.70710677, %v2587_v5 }
  0xbd   :  { %v718_v59 = vsel %vm2606_vm5, %v2514_v38, %v714_v22  ;;  %vm355_vm6 = vweird.f32 %v2508_v32  ;;  %v2620_v56 = vadd.f32 1.0, %v788_v21  ;;  %v300_v60 = vmul.f32 3.8918573e-05, %v2591_v27 }
  0xbe   :  { %4130 = vst [vmem:[#allocation14_spill] sm:$0xff] %v2614_v53  ;;  %v823_v13 = vadd.f32 0.014752088, %v822_v30  ;;  %v353_v25 = vmul.f32 %v2553_v8, %v352_v49  ;;  %vm755_vm7 = vweird.f32 %v2501_v19  ;;  %v378_v63 = vadd.f32 1.1283791, %v377_v35  ;;  %vm2679_vm12 = vmor %vm355_vm6, %vm356_vm4 }
  0xbf   :  { %v425_v9 = vadd.f32 0.112945676, %v424_v16  ;;  %v754_v1 = vadd.f32 %v2540_v0, %v753_v10  ;;  %vm756_vm8 = vweird.f32 %v2540_v0  ;;  %vm2627_vm9 = vcmp.eq.f32.partialorder %v759_v43, 8.507059e+37 }
  0xc0   :  { %v762_v38 = vor.u32 1.1754944e-38, %v761_v45  ;;  %v2632_v22 = vadd.f32 %v249_v57, %v2423_v28  ;;  %v723_v21 = vsel %vm2577_vm3, %v722_v37, %v718_v59  ;;  %v393_v30 = vmul.f32 %v2568_v44, %v392_v51  ;;  %vm2648_vm10 = vmor %vm755_vm7, %vm756_vm8 }
  0xc1   :  { %v775_v49 = vmul.f32 %v774_v46, %v2469_v12  ;;  %v447_v35 = vmul.f32 %v2614_v53, %v2614_v53  ;;  %2079 = vrcp.f32 %v2620_v56  ;;  %v413_v16 = vmul.f32 %v412_v23, %v2503_v26 }
  0xc2   :  { %v301_v10 = vadd.f32 0.001143296, %v300_v60  ;;  %v824_v43 = vmul.f32 %v823_v13, %v2544_v4  ;;  %v2644_v28 = vadd.f32 %v2553_v8, %v353_v25  ;;  %v2653_v33 = vmul.f32 %v378_v63, %v2435_v34 }
  0xc3   :  { %v399_v45 = vand.u32 2147483647, %v2520_v47  ;;  %v426_v46 = vmul.f32 %v425_v9, %v2503_v26  ;;  %v758_v48 = vsel %vm2648_vm10, %v2540_v0, %v754_v1  ;;  %vm396_vm11 = vweird.f32 %v2568_v44 }
  0xc4   :  { %4133 = vst [vmem:[#allocation15_spill] sm:$0xff] %v2644_v28  ;;  %v401_v51 = vand.u32 2147483648, %v2520_v47  ;;  %v2663_v19 = vmul.f32 0.70710677, %v2632_v22  ;;  %v394_v23 = vadd.f32 %v2568_v44, %v393_v30  ;;  %v776_v57 = vadd.f32 0.18741608, %v775_v49  ;;  %v222_v49 = vpop.f32.mrf.mxu0 }
  0xc5   :  { %4136 = vst [vmem:[#allocation16_spill] sm:$0xff] %v2653_v33  ;;  %v809_v34 = vmul.f32 2.1237322e-06, %v2544_v4  ;;  %v2667_v59 = vmin.f32 %v447_v35, 16.0  ;;  %v414_v60 = vadd.f32 0.05243302, %v413_v16  ;;  %v302_v13 = vmul.f32 %v301_v10, %v2591_v27 }
  0xc6   :  { %v825_v25 = vadd.f32 0.112945676, %v824_v43  ;;  %v847_v0 = vmul.f32 %v2663_v19, %v2663_v19  ;;  %v2673_v63 = vmul.f32 %v723_v21, %v2556_v18  ;;  %v4137_v9 = vmov 0  ;;  %v252_v18 = vpop.f32.mrf.mxu3 }
  0xc7   :  { %v4138_v9 = vsel %vm2679_vm12, 4294967295, %v4137_v9  ;;  %vm395_vm13 = vweird.f32 %v2520_v47  ;;  %v427_v1 = vadd.f32 0.4994258, %v426_v46  ;;  %v289_v30 = vmul.f32 2.1237322e-06, %v2591_v27  ;;  %v2685_v35 = vpop.eup %2079 }
  0xc8   :  { %4139 = vst [vmem:[#allocation17_spill] sm:$0xff] %v4138_v9  ;;  %vm2691_vm14 = vcmp.eq.f32.partialorder %v399_v45, 8.507059e+37  ;;  %v402_v16 = vor.u32 1.1754944e-38, %v401_v51  ;;  %v2695_v10 = vmin.f32 %v847_v0, 16.0  ;;  %v763_v47 = vsel %vm2627_vm9, %v762_v38, %v758_v48  ;;  %vm2701_vm15 = vmor %vm395_vm13, %vm396_vm11 }
  0xc9   :  { %v777_v37 = vmul.f32 %v776_v57, %v2469_v12  ;;  %v810_v46 = vadd.f32 0.00028619796, %v809_v34  ;;  %v460_v45 = vmul.f32 3.8918573e-05, %v2667_v59  ;;  %v398_v51 = vsel %vm2701_vm15, %v2568_v44, %v394_v23 }
  0xca   :  { %v415_v0 = vmul.f32 %v414_v60, %v2503_v26  ;;  %v303_v3 = vadd.f32 0.014752088, %v302_v13  ;;  %v826_v38 = vmul.f32 %v825_v25, %v2544_v4  ;;  %v791_v48 = vmul.f32 %v2685_v35, %v2620_v56 }
  0xcb   :  { %v428_v61 = vmul.f32 %v427_v1, %v2503_v26  ;;  %v290_v54 = vadd.f32 0.00028619796, %v289_v30  ;;  %v2716_v12 = vadd.f32 %v222_v49, %v2407_v17  ;;  %v2719_v57 = vmul.f32 %v763_v47, %v2611_v39 }
  0xcc   :  { %v2722_v34 = vmul.f32 0.5, %v2499_v14  ;;  %v860_v44 = vmul.f32 3.8918573e-05, %v2695_v10  ;;  %v2726_v23 = vadd.f32 %v252_v18, %v2402_v15  ;;  %v2730_v60 = vsel %vm2691_vm14, %v402_v16, %v398_v51 }
  0xcd   :  { %4144 = vst [vmem:[#allocation18_spill] sm:$0xff] %v2716_v12  ;;  %v778_v13 = vadd.f32 1.1283791, %v777_v37  ;;  %v811_v25 = vmul.f32 %v810_v46, %v2544_v4  ;;  %v461_v17 = vadd.f32 0.001143296, %v460_v45  ;;  %v304_v39 = vmul.f32 %v303_v3, %v2591_v27 }
  0xce   :  { %4145 = vst [vmem:[#allocation19_spill] sm:$0xff] %v2730_v60  ;;  %v416_v1 = vadd.f32 0.18741608, %v415_v0  ;;  %v827_v30 = vadd.f32 0.4994258, %v826_v38  ;;  %v792_v14 = vsub.f32 1.0, %v791_v48  ;;  %v291_v43 = vmul.f32 %v290_v54, %v2591_v27  ;;  %v225_v54 = vpop.f32.mrf.mxu0 }
  0xcf   :  { %v861_v49 = vadd.f32 0.001143296, %v860_v44  ;;  %v2734_v47 = vadd.f32 1.0, %v428_v61  ;;  %v2738_v15 = vmul.f32 0.70710677, %v2716_v12  ;;  %v801_v45 = vand.u32 2147483648, %v2620_v56 }
  0xd0   :  { %v449_v18 = vmul.f32 2.1237322e-06, %v2667_v59  ;;  %v849_v21 = vmul.f32 2.1237322e-06, %v2695_v10  ;;  %v2744_v37 = vmul.f32 0.70710677, %v2726_v23  ;;  %v462_v51 = vmul.f32 %v461_v17, %v2667_v59 }
  0xd1   :  { %4146 = vst [vmem:[#allocation20_spill] sm:$0xff] %v2738_v15  ;;  %v862_v16 = vmul.f32 %v861_v49, %v2695_v10  ;;  %v799_v46 = vand.u32 2147483647, %v2620_v56  ;;  %v812_v61 = vadd.f32 0.0036580483, %v811_v25  ;;  %v417_v0 = vmul.f32 %v416_v1, %v2503_v26 }
  0xd2   :  { %v305_v3 = vadd.f32 0.112945676, %v304_v39  ;;  %v828_v38 = vmul.f32 %v827_v30, %v2544_v4  ;;  %v793_v44 = vmul.f32 %v2685_v35, %v792_v14  ;;  %2081 = vrcp.f32 %v2734_v47 }
  0xd3   :  { %v863_v48 = vadd.f32 0.014752088, %v862_v16  ;;  %v292_v49 = vadd.f32 0.0036580483, %v291_v43  ;;  %v487_v20 = vmul.f32 %v2738_v15, %v2738_v15  ;;  %v450_v29 = vadd.f32 0.00028619796, %v449_v18 }
  0xd4   :  { %v850_v40 = vadd.f32 0.00028619796, %v849_v21  ;;  %v887_v17 = vmul.f32 %v2744_v37, %v2744_v37  ;;  %v2759_v26 = vmul.f32 %v778_v13, %v2456_v55  ;;  %v802_v1 = vor.u32 1.1754944e-38, %v801_v45 }
  0xd5   :  { %v864_v25 = vmul.f32 %v863_v48, %v2695_v10  ;;  %v813_v39 = vmul.f32 %v812_v61, %v2544_v4  ;;  %v463_v30 = vadd.f32 0.014752088, %v462_v51  ;;  %v418_v14 = vadd.f32 1.1283791, %v417_v0 }
  0xd6   :  { %v306_v43 = vmul.f32 %v305_v3, %v2591_v27  ;;  %v2763_v16 = vadd.f32 1.0, %v828_v38  ;;  %vm796_vm0 = vweird.f32 %v2685_v35  ;;  %v293_v18 = vmul.f32 %v292_v49, %v2591_v27 }
  0xd7   :  { %v865_v5 = vadd.f32 0.112945676, %v864_v25  ;;  %v2767_v21 = vmin.f32 %v487_v20, 16.0  ;;  %v2769_v48 = vmin.f32 %v887_v17, 16.0  ;;  %v794_v55 = vadd.f32 %v2685_v35, %v793_v44  ;;  %v228_v17 = vpop.f32.mrf.mxu0 }
  0xd8   :  { %vm2772_vm1 = vcmp.eq.f32.partialorder %v799_v46, 8.507059e+37  ;;  %v451_v45 = vmul.f32 %v450_v29, %v2667_v59  ;;  %v851_v61 = vmul.f32 %v850_v40, %v2695_v10  ;;  %v2779_v0 = vpop.eup %2081  ;;  %v814_v3 = vadd.f32 0.05243302, %v813_v39 }
  0xd9   :  { %v866_v51 = vmul.f32 %v865_v5, %v2695_v10  ;;  %v464_v20 = vmul.f32 %v463_v30, %v2667_v59  ;;  %v889_v38 = vmul.f32 2.1237322e-06, %v2769_v48  ;;  %v900_v49 = vmul.f32 3.8918573e-05, %v2769_v48 }
  0xda   :  { %v307_v44 = vadd.f32 0.4994258, %v306_v43  ;;  %2083 = vrcp.f32 %v2763_v16  ;;  %v2786_v46 = vmul.f32 0.5, %v2632_v22  ;;  %vm795_vm2 = vweird.f32 %v2620_v56 }
  0xdb   :  { %v867_v29 = vadd.f32 0.4994258, %v866_v51  ;;  %v500_v40 = vmul.f32 3.8918573e-05, %v2767_v21  ;;  %v890_v5 = vadd.f32 0.00028619796, %v889_v38  ;;  %vm2792_vm3 = vmor %vm795_vm2, %vm796_vm0  ;;  %v431_v51 = vmul.f32 %v2779_v0, %v2734_v47 }
  0xdc   :  { %v901_v25 = vadd.f32 0.001143296, %v900_v49  ;;  %v294_v30 = vadd.f32 0.05243302, %v293_v18  ;;  %v452_v43 = vadd.f32 0.0036580483, %v451_v45  ;;  %v798_v56 = vsel %vm2792_vm3, %v2685_v35, %v794_v55 }
  0xdd   :  { %v852_v12 = vadd.f32 0.0036580483, %v851_v61  ;;  %v868_v22 = vmul.f32 %v867_v29, %v2695_v10  ;;  %v815_v38 = vmul.f32 %v814_v3, %v2544_v4  ;;  %v465_v49 = vadd.f32 0.112945676, %v464_v20 }
  0xde   :  { %v891_v60 = vmul.f32 %v890_v5, %v2769_v48  ;;  %v902_v18 = vmul.f32 %v901_v25, %v2769_v48  ;;  %v2808_v45 = vadd.f32 %v225_v54, %v2459_v58  ;;  %v2811_v61 = vmul.f32 %v418_v14, %v2483_v52 }
  0xdf   :  { %v2803_v36 = vadd.f32 1.0, %v868_v22  ;;  %v441_v35 = vand.u32 2147483648, %v2734_v47  ;;  %v308_v55 = vmul.f32 %v307_v44, %v2591_v27  ;;  %v501_v29 = vadd.f32 0.001143296, %v500_v40 }
  0xe0   :  { %4151 = vst [vmem:[#allocation21_spill] sm:$0xff] %v2808_v45  ;;  %v2815_v39 = vpop.eup %2083  ;;  %v453_v20 = vmul.f32 %v452_v43, %v2667_v59  ;;  %v853_v5 = vmul.f32 %v852_v12, %v2695_v10  ;;  %v803_v58 = vsel %vm2772_vm1, %v802_v1, %v798_v56  ;;  %v432_v52 = vsub.f32 1.0, %v431_v51 }
  0xe1   :  { %4152 = vst [vmem:[#allocation22_spill] sm:$0xff] %v2811_v61  ;;  %2085 = vrcp.f32 %v2803_v36  ;;  %v295_v54 = vmul.f32 %v294_v30, %v2591_v27  ;;  %v816_v14 = vadd.f32 0.18741608, %v815_v38  ;;  %v466_v44 = vmul.f32 %v465_v49, %v2667_v59 }
  0xe2   :  { %v892_v40 = vadd.f32 0.0036580483, %v891_v60  ;;  %v903_v25 = vadd.f32 0.014752088, %v902_v18  ;;  %v2826_v22 = vmul.f32 0.70710677, %v2808_v45  ;;  %v831_v12 = vmul.f32 %v2815_v39, %v2763_v16 }
  0xe3   :  { %v2828_v3 = vor.u32 1.1754944e-38, %v441_v35  ;;  %v2830_v43 = vadd.f32 1.0, %v308_v55  ;;  %v502_v1 = vmul.f32 %v501_v29, %v2767_v21  ;;  %v454_v13 = vadd.f32 0.05243302, %v453_v20  ;;  %v231_v35 = vpop.f32.mrf.mxu0 }
  0xe4   :  { %v854_v56 = vadd.f32 0.05243302, %v853_v5  ;;  %v904_v30 = vmul.f32 %v903_v25, %v2769_v48  ;;  %v527_v60 = vmul.f32 %v2826_v22, %v2826_v22  ;;  %v2839_v51 = vmul.f32 %v803_v58, %v2759_v26 }
  0xe5   :  { %4153 = vst [vmem:[#allocation23_spill] sm:$0xff] %v2828_v3  ;;  %v433_v38 = vmul.f32 %v2779_v0, %v432_v52  ;;  %v2842_v49 = vadd.f32 0.18741608, %v295_v54  ;;  %v817_v18 = vmul.f32 %v816_v14, %v2544_v4  ;;  %v467_v29 = vadd.f32 0.4994258, %v466_v44 }
  0xe6   :  { %v489_v20 = vmul.f32 2.1237322e-06, %v2767_v21  ;;  %v893_v5 = vmul.f32 %v892_v40, %v2769_v48  ;;  %v2850_v25 = vadd.f32 %v228_v17, %v2392_v6  ;;  %v832_v45 = vsub.f32 1.0, %v831_v12 }
  0xe7   :  { %4154 = vst [vmem:[#allocation24_spill] sm:$0xff] %v2842_v49  ;;  %v2845_v55 = vpop.eup %2085  ;;  %v503_v26 = vadd.f32 0.014752088, %v502_v1  ;;  %v905_v58 = vadd.f32 0.112945676, %v904_v30  ;;  %v2852_v33 = vmin.f32 %v527_v60, 16.0  ;;  %2087 = vrcp.f32 %v2830_v43 }
  0xe8   :  { %4155 = vst [vmem:[#allocation25_spill] sm:$0xff] %v2850_v25  ;;  %v455_v4 = vmul.f32 %v454_v13, %v2667_v59  ;;  %v855_v52 = vmul.f32 %v854_v56, %v2695_v10  ;;  %v871_v54 = vmul.f32 %v2845_v55, %v2803_v36  ;;  %v2860_v14 = vadd.f32 %v2779_v0, %v433_v38 }
  0xe9   :  { %v818_v44 = vadd.f32 1.1283791, %v817_v18  ;;  %v906_v6 = vmul.f32 %v905_v58, %v2769_v48  ;;  %v540_v17 = vmul.f32 3.8918573e-05, %v2852_v33  ;;  %v468_v40 = vmul.f32 %v467_v29, %v2667_v59 }
  0xea   :  { %v490_v12 = vadd.f32 0.00028619796, %v489_v20  ;;  %v894_v1 = vadd.f32 0.05243302, %v893_v5  ;;  %v2866_v30 = vmul.f32 0.70710677, %v2850_v25  ;;  %v833_v13 = vmul.f32 %v2815_v39, %v832_v45 }
  0xeb   :  { %v504_v56 = vmul.f32 %v503_v26, %v2767_v21  ;;  %v907_v60 = vadd.f32 0.4994258, %v906_v6  ;;  %v541_v41 = vadd.f32 0.001143296, %v540_v17  ;;  %v2870_v38 = vadd.f32 0.18741608, %v455_v4  ;;  %v234_v17 = vpop.f32.mrf.mxu0 }
  0xec   :  { %v856_v18 = vadd.f32 0.18741608, %v855_v52  ;;  %v872_v24 = vsub.f32 1.0, %v871_v54  ;;  %v567_v58 = vmul.f32 %v2866_v30, %v2866_v30  ;;  %v2875_v29 = vmul.f32 %v818_v44, %v2512_v2 }
  0xed   :  { %v841_v20 = vand.u32 2147483648, %v2763_v16  ;;  %v908_v5 = vmul.f32 %v907_v60, %v2769_v48  ;;  %v542_v45 = vmul.f32 %v541_v41, %v2852_v33  ;;  %v2880_v25 = vpop.eup %2087  ;;  %vm836_vm4 = vweird.f32 %v2815_v39 }
  0xee   :  { %v2883_v26 = vadd.f32 1.0, %v468_v40  ;;  %v895_v4 = vmul.f32 %v894_v1, %v2769_v48  ;;  %v2886_v52 = vmin.f32 %v567_v58, 16.0  ;;  %v2889_v54 = vadd.f32 %v2815_v39, %v833_v13 }
  0xef   :  { %v491_v2 = vmul.f32 %v490_v12, %v2767_v21  ;;  %v505_v44 = vadd.f32 0.112945676, %v504_v56  ;;  %v2892_v6 = vadd.f32 1.0, %v908_v5  ;;  %v857_v41 = vmul.f32 %v856_v18, %v2695_v10 }
  0xf0   :  { %v873_v60 = vmul.f32 %v2845_v55, %v872_v24  ;;  %v543_v61 = vadd.f32 0.014752088, %v542_v45  ;;  %v580_v40 = vmul.f32 3.8918573e-05, %v2886_v52  ;;  %vm835_vm5 = vweird.f32 %v2763_v16 }
  0xf1   :  { %v839_v1 = vand.u32 2147483647, %v2763_v16  ;;  %2089 = vrcp.f32 %v2892_v6  ;;  %v2901_v13 = vadd.f32 %v231_v35, %v2398_v11  ;;  %vm2905_vm6 = vmor %vm835_vm5, %vm836_vm4  ;;  %v2909_v10 = vor.u32 1.1754944e-38, %v841_v20 }
  0xf2   :  { %2091 = vrcp.f32 %v2883_v26  ;;  %v896_v24 = vadd.f32 0.18741608, %v895_v4  ;;  %v2913_v56 = vadd.f32 %v234_v17, %v2446_v42  ;;  %v492_v16 = vadd.f32 0.0036580483, %v491_v2 }
  0xf3   :  { %4156 = vst [vmem:[#allocation26_spill] sm:$0xff] %v2901_v13  ;;  %v506_v35 = vmul.f32 %v505_v44, %v2767_v21  ;;  %v581_v18 = vadd.f32 0.001143296, %v580_v40  ;;  %v858_v58 = vadd.f32 1.1283791, %v857_v41  ;;  %v874_v5 = vadd.f32 %v2845_v55, %v873_v60 }
  0xf4   :  { %4159 = vst [vmem:[#allocation27_spill] sm:$0xff] %v2913_v56  ;;  %vm876_vm7 = vweird.f32 %v2845_v55  ;;  %v544_v20 = vmul.f32 %v543_v61, %v2852_v33  ;;  %vm875_vm8 = vweird.f32 %v2803_v36  ;;  %v881_v42 = vand.u32 2147483648, %v2803_v36 }
  0xf5   :  { %v582_v45 = vmul.f32 %v581_v18, %v2886_v52  ;;  %v2927_v4 = vmul.f32 0.70710677, %v2901_v13  ;;  %v879_v2 = vand.u32 2147483647, %v2803_v36  ;;  %v897_v44 = vmul.f32 %v896_v24, %v2769_v48  ;;  %vm2935_vm9 = vmor %vm875_vm8, %vm876_vm7 }
  0xf6   :  { %v529_v17 = vmul.f32 2.1237322e-06, %v2852_v33  ;;  %v2933_v41 = vmul.f32 0.70710677, %v2913_v56  ;;  %v493_v40 = vmul.f32 %v492_v16, %v2767_v21  ;;  %v507_v18 = vadd.f32 0.4994258, %v506_v35 }
  0xf7   :  { %v2090_v60 = vpop.eup %2089  ;;  %v583_v11 = vadd.f32 0.014752088, %v582_v45  ;;  %v607_v13 = vmul.f32 %v2927_v4, %v2927_v4  ;;  %v859_v48 = vmul.f32 %v858_v58, %v2663_v19  ;;  %v878_v24 = vsel %vm2935_vm9, %v2845_v55, %v874_v5 }
  0xf8   :  { %v2942_v36 = vpop.eup %2091  ;;  %v911_v31 = vmul.f32 %v2090_v60, %v2892_v6  ;;  %v545_v28 = vadd.f32 0.112945676, %v544_v20  ;;  %vm2949_vm10 = vcmp.eq.f32.partialorder %v839_v1, 8.507059e+37  ;;  %v882_v16 = vor.u32 1.1754944e-38, %v881_v42 }
  0xf9   :  { %v584_v35 = vmul.f32 %v583_v11, %v2886_v52  ;;  %v2954_v45 = vmin.f32 %v607_v13, 16.0  ;;  %v647_v9 = vmul.f32 %v2933_v41, %v2933_v41  ;;  %vm880_vm11 = vcmp.eq.f32.partialorder %v879_v2, 8.507059e+37 }
  0xfa   :  { %v898_v19 = vadd.f32 1.1283791, %v897_v44  ;;  %v912_v58 = vsub.f32 1.0, %v911_v31  ;;  %v530_v61 = vadd.f32 0.00028619796, %v529_v17  ;;  %v883_v55 = vsel %vm880_vm11, %v882_v16, %v878_v24 }
  0xfb   :  { %v919_v5 = vand.u32 2147483647, %v2892_v6  ;;  %v921_v1 = vand.u32 2147483648, %v2892_v6  ;;  %v585_v20 = vadd.f32 0.112945676, %v584_v35  ;;  %vm916_vm13 = vweird.f32 %v2090_v60 }
  0xfc   :  { %v913_v56 = vmul.f32 %v2090_v60, %v912_v58  ;;  %v546_v42 = vmul.f32 %v545_v28, %v2852_v33  ;;  %v620_v13 = vmul.f32 3.8918573e-05, %v2954_v45  ;;  %v569_v11 = vmul.f32 2.1237322e-06, %v2886_v52 }
  0xfd   :  { %v586_v3 = vmul.f32 %v585_v20, %v2886_v52  ;;  %v609_v2 = vmul.f32 2.1237322e-06, %v2954_v45  ;;  %v2965_v31 = vmin.f32 %v647_v9, 16.0  ;;  %v508_v44 = vmul.f32 %v507_v18, %v2767_v21 }
  0xfe   :  { %v914_v17 = vadd.f32 %v2090_v60, %v913_v56  ;;  %vm915_vm14 = vweird.f32 %v2892_v6  ;;  %v531_v24 = vmul.f32 %v530_v61, %v2852_v33  ;;  %v884_v16 = vmul.f32 %v883_v55, %v859_v48 }
  0xff   :  { %v899_v28 = vmul.f32 %v898_v19, %v2744_v37  ;;  %vm917_vm15 = vmor %vm915_vm14, %vm916_vm13  ;;  %vm920_vm0 = vcmp.eq.f32.partialorder %v919_v5, 8.507059e+37  ;;  %v922_v35 = vor.u32 1.1754944e-38, %v921_v1  ;;  %v547_v53 = vadd.f32 0.4994258, %v546_v42 }
 0x100   :  { %v918_v58 = vsel %vm917_vm15, %v2090_v60, %v914_v17  ;;  %v587_v20 = vadd.f32 0.4994258, %v586_v3  ;;  %v621_v49 = vadd.f32 0.001143296, %v620_v13  ;;  %v570_v9 = vadd.f32 0.00028619796, %v569_v11 }
 0x101   :  { %v923_v27 = vsel %vm920_vm0, %v922_v35, %v918_v58  ;;  %v610_v15 = vadd.f32 0.00028619796, %v609_v2  ;;  %v649_v18 = vmul.f32 2.1237322e-06, %v2965_v31  ;;  %v4164_v6 = vsel %vm2905_vm6, %v2815_v39, %v2889_v54 }
 0x102   :  { %v843_v37 = vsel %vm2949_vm10, %v2909_v10, %v4164_v6  ;;  %v494_v56 = vadd.f32 0.05243302, %v493_v40  ;;  %v924_v48 = vmul.f32 %v923_v27, %v899_v28  ;;  %v622_v60 = vmul.f32 %v621_v49, %v2954_v45 }
 0x103   :  { %v2981_v3 = vadd.f32 1.0, %v508_v44  ;;  %v532_v19 = vadd.f32 0.0036580483, %v531_v24  ;;  %v588_v61 = vmul.f32 %v587_v20, %v2886_v52  ;;  %v2016_v55 = vclamps-f32 %v884_v16, 1.0 }
 0x104   :  { %v548_v5 = vmul.f32 %v547_v53, %v2852_v33  ;;  %v623_v12 = vadd.f32 0.014752088, %v622_v60  ;;  %v660_v1 = vmul.f32 3.8918573e-05, %v2965_v31  ;;  %v2017_v39 = vclamps-f32 %v924_v48, 1.0 }
 0x105   :  { %v2988_v8 = vmul.f32 %v2880_v25, %v2830_v43  ;;  %v571_v27 = vmul.f32 %v570_v9, %v2886_v52  ;;  %v611_v49 = vmul.f32 %v610_v15, %v2954_v45  ;;  %v650_v54 = vadd.f32 0.00028619796, %v649_v18 }
 0x106   :  { %v844_v10 = vmul.f32 %v843_v37, %v2875_v29  ;;  %v471_v40 = vmul.f32 %v2942_v36, %v2883_v26  ;;  %v495_v53 = vmul.f32 %v494_v56, %v2767_v21  ;;  %v270_v42 = vmul.f32 0.5, %v2726_v23 }
 0x107   :  { %2093 = vrcp.f32 %v2981_v3  ;;  %v533_v13 = vmul.f32 %v532_v19, %v2852_v33  ;;  %v2999_v11 = vadd.f32 1.0, %v588_v61  ;;  %v624_v2 = vmul.f32 %v623_v12, %v2954_v45 }
 0x108   :  { %v3002_v44 = vadd.f32 1.0, %v548_v5  ;;  %v661_v15 = vadd.f32 0.001143296, %v660_v1  ;;  %v942_v17 = vadd.f32 1.0, %v2017_v39  ;;  %v941_v29 = vadd.f32 1.0, %v2016_v55 }
 0x109   :  { %v572_v24 = vadd.f32 0.0036580483, %v571_v27  ;;  %v612_v16 = vadd.f32 0.0036580483, %v611_v49  ;;  %v625_v28 = vadd.f32 0.112945676, %v624_v2  ;;  %v651_v35 = vmul.f32 %v650_v54, %v2965_v31 }
 0x10a   :  { %v662_v23 = vmul.f32 %v661_v15, %v2965_v31  ;;  %v958_v58 = vmul.f32 %v942_v17, %v270_v42  ;;  %v2015_v20 = vclamps-f32 %v844_v10, 1.0  ;;  %v2014_v9 = vclamps-f32 %v2839_v51, 1.0 }
 0x10b   :  { %v472_v18 = vsub.f32 1.0, %v471_v40  ;;  %v534_v6 = vadd.f32 0.05243302, %v533_v13  ;;  %2095 = vrcp.f32 %v2999_v11  ;;  %v626_v37 = vmul.f32 %v625_v28, %v2954_v45 }
 0x10c   :  { %2097 = vrcp.f32 %v3002_v44  ;;  %v663_v56 = vadd.f32 0.014752088, %v662_v23  ;;  %1071 = vmatpush.msra.mxu1 %v958_v58  ;;  %2035 = vmatpush.msra.mxu2 %v958_v58  ;;  %v957_v48 = vmul.f32 %v941_v29, %v2786_v46  ;;  %v940_v60 = vadd.f32 1.0, %v2015_v20 }
 0x10d   :  { %v3011_v19 = vpop.eup %2093  ;;  %v457_v61 = vmul.f32 %v2870_v38, %v2667_v59  ;;  %v613_v51 = vmul.f32 %v612_v16, %v2954_v45  ;;  %2036 = vmatpush.msrb.mxu3 %v958_v58  ;;  %v939_v55 = vadd.f32 1.0, %v2014_v9  ;;  %v2013_v5 = vclamps-f32 %v2719_v57, 1.0 }
 0x10e   :  { %v573_v12 = vmul.f32 %v572_v24, %v2886_v52  ;;  %v627_v1 = vadd.f32 0.4994258, %v626_v37  ;;  %v652_v39 = vadd.f32 0.0036580483, %v651_v35  ;;  %v664_v27 = vmul.f32 %v663_v56, %v2965_v31  ;;  %1072 = vmatpush.msra.mxu1 %v957_v48  ;;  %2037 = vmatpush.msra.mxu2 %v957_v48 }
 0x10f   :  { %v312_v46 = vsub.f32 1.0, %v2988_v8  ;;  %v473_v49 = vmul.f32 %v2942_v36, %v472_v18  ;;  %v496_v54 = vadd.f32 0.18741608, %v495_v53  ;;  %2038 = vmatpush.msrb.mxu3 %v957_v48  ;;  %v956_v59 = vmul.f32 %v940_v60, %v2722_v34 }
 0x110   :  { %v511_v38 = vmul.f32 %v3011_v19, %v2981_v3  ;;  %v535_v57 = vmul.f32 %v534_v6, %v2852_v33  ;;  %v628_v10 = vmul.f32 %v627_v1, %v2954_v45  ;;  %v665_v40 = vadd.f32 0.112945676, %v664_v27 }
 0x111   :  { %v3026_v42 = vpop.eup %2095  ;;  %v614_v13 = vadd.f32 0.05243302, %v613_v51  ;;  %1073 = vmatpush.msra.mxu1 %v956_v59  ;;  %2039 = vmatpush.msra.mxu2 %v956_v59  ;;  %v955_v8 = vmul.f32 %v939_v55, %v2547_v7  ;;  %v938_v2 = vadd.f32 1.0, %v2013_v5  ;;  %v2012_v53 = vclamps-f32 %v2673_v63, 1.0 }
 0x112   :  { %v3030_v15 = vpop.eup %2097  ;;  %v574_v34 = vadd.f32 0.05243302, %v573_v12  ;;  %v3032_v17 = vadd.f32 1.0, %v628_v10  ;;  %v653_v29 = vmul.f32 %v652_v39, %v2965_v31  ;;  %v666_v24 = vmul.f32 %v665_v40, %v2965_v31  ;;  %2040 = vmatpush.msrb.mxu3 %v956_v59 }
 0x113   :  { %vm476_vm1 = vweird.f32 %v2942_v36  ;;  %v481_v16 = vand.u32 2147483648, %v2883_v26  ;;  %1074 = vmatpush.msra.mxu1 %v955_v8  ;;  %2041 = vmatpush.msra.mxu2 %v955_v8  ;;  %v954_v7 = vmul.f32 %v938_v2, %v2536_v62  ;;  %v937_v28 = vadd.f32 1.0, %v2012_v53 }
 0x114   :  { %v512_v63 = vsub.f32 1.0, %v511_v38  ;;  %v536_v35 = vadd.f32 0.18741608, %v535_v57  ;;  %v591_v23 = vmul.f32 %v3026_v42, %v2999_v11  ;;  %2099 = vrcp.f32 %v3032_v17  ;;  %2042 = vmatpush.msrb.mxu3 %v955_v8 }
 0x115   :  { %v551_v58 = vmul.f32 %v3030_v15, %v3002_v44  ;;  %v615_v20 = vmul.f32 %v614_v13, %v2954_v45  ;;  %v667_v9 = vadd.f32 0.4994258, %v666_v24  ;;  %1075 = vmatpush.msra.mxu1 %v954_v7  ;;  %2043 = vmatpush.msra.mxu2 %v954_v7  ;;  %v953_v18 = vmul.f32 %v937_v28, %v2523_v50 }
 0x116   :  { %v3047_v62 = vadd.f32 %v2942_v36, %v473_v49  ;;  %v497_v6 = vmul.f32 %v496_v54, %v2767_v21  ;;  %v575_v37 = vmul.f32 %v574_v34, %v2886_v52  ;;  %v654_v56 = vadd.f32 0.05243302, %v653_v29  ;;  %2044 = vmatpush.msrb.mxu3 %v954_v7 }
 0x117   :  { %v3052_v48 = vmul.f32 %v2880_v25, %v312_v46  ;;  %v3054_v60 = vadd.f32 1.1283791, %v457_v61  ;;  %vm475_vm2 = vweird.f32 %v2883_v26  ;;  %v668_v51 = vmul.f32 %v667_v9, %v2965_v31  ;;  %1076 = vmatpush.msra.mxu1 %v953_v18  ;;  %2045 = vmatpush.msra.mxu2 %v953_v18 }
 0x118   :  { %v479_v50 = vand.u32 2147483647, %v2883_v26  ;;  %v513_v55 = vmul.f32 %v3011_v19, %v512_v63  ;;  %v537_v21 = vmul.f32 %v536_v35, %v2852_v33  ;;  %v592_v5 = vsub.f32 1.0, %v591_v23  ;;  %2046 = vmatpush.msrb.mxu3 %v953_v18  ;;  %vm3063_vm3 = vmor %vm475_vm2, %vm476_vm1 }
 0x119   :  { %v3067_v61 = vor.u32 1.1754944e-38, %v481_v16  ;;  %v552_v1 = vsub.f32 1.0, %v551_v58  ;;  %v616_v39 = vadd.f32 0.18741608, %v615_v20  ;;  %v3069_v27 = vadd.f32 1.0, %v668_v51 }
 0x11a   :  { %v2100_v46 = vpop.eup %2099  ;;  %v478_v33 = vsel %vm3063_vm3, %v2942_v36, %v3047_v62  ;;  %v3075_v26 = vadd.f32 1.1283791, %v497_v6  ;;  %v576_v49 = vadd.f32 0.18741608, %v575_v37  ;;  %v655_v54 = vmul.f32 %v654_v56, %v2965_v31  ;;  %v4193_v62 = vld [vmem:[#allocation14_spill] sm:$0xff] }
 0x11b   :  { %v519_v59 = vand.u32 2147483647, %v2981_v3  ;;  %v521_v38 = vand.u32 2147483648, %v2981_v3  ;;  %v631_v57 = vmul.f32 %v2100_v46, %v3032_v17  ;;  %2101 = vrcp.f32 %v3069_v27 }
 0x11c   :  { %v3083_v10 = vadd.f32 %v3011_v19, %v513_v55  ;;  %vm516_vm4 = vweird.f32 %v3011_v19  ;;  %v3086_v40 = vadd.f32 1.1283791, %v537_v21  ;;  %v593_v13 = vmul.f32 %v3026_v42, %v592_v5  ;;  %v959_v55 = vld [vmem:[%s4091_s3] sm:$0xff] }
 0x11d   :  { %vm515_vm5 = vweird.f32 %v2981_v3  ;;  %v553_v8 = vmul.f32 %v3030_v15, %v552_v1  ;;  %vm555_vm6 = vweird.f32 %v3002_v44  ;;  %v617_v2 = vmul.f32 %v616_v39, %v2954_v45 }
 0x11e   :  { %v632_v53 = vsub.f32 1.0, %v631_v57  ;;  %vm556_vm7 = vweird.f32 %v3030_v15  ;;  %v559_v34 = vand.u32 2147483647, %v3002_v44  ;;  %v577_v29 = vmul.f32 %v576_v49, %v2886_v52 }
 0x11f   :  { %v656_v24 = vadd.f32 0.18741608, %v655_v54  ;;  %vm436_vm8 = vweird.f32 %v2779_v0  ;;  %v599_v16 = vand.u32 2147483647, %v2999_v11  ;;  %vm636_vm9 = vweird.f32 %v2100_v46 }
 0x120   :  { %v633_v7 = vmul.f32 %v2100_v46, %v632_v53  ;;  %v641_v28 = vand.u32 2147483648, %v3032_v17  ;;  %v594_v63 = vadd.f32 %v3026_v42, %v593_v13  ;;  %vm596_vm10 = vweird.f32 %v3026_v42 }
 0x121   :  { %v601_v45 = vand.u32 2147483648, %v2999_v11  ;;  %v639_v35 = vand.u32 2147483647, %v3032_v17  ;;  %v2102_v23 = vpop.eup %2101  ;;  %v554_v52 = vadd.f32 %v3030_v15, %v553_v8  ;;  %v618_v58 = vadd.f32 1.1283791, %v617_v2 }
 0x122   :  { %v634_v20 = vadd.f32 %v2100_v46, %v633_v7  ;;  %vm635_vm13 = vweird.f32 %v3032_v17  ;;  %vm3106_vm14 = vcmp.eq.f32.partialorder %v479_v50, 8.507059e+37  ;;  %vm3110_vm15 = vcmp.eq.f32.partialorder %v519_v59, 8.507059e+37 }
 0x123   :  { %v561_v6 = vand.u32 2147483648, %v3002_v44  ;;  %vm595_vm0 = vweird.f32 %v2999_v11  ;;  %vm3117_vm1 = vmor %vm635_vm13, %vm636_vm9  ;;  %v657_v56 = vmul.f32 %v656_v24, %v2965_v31  ;;  %v671_v17 = vmul.f32 %v2102_v23, %v3069_v27  ;;  %v4209_v24 = vld [vmem:[#allocation25_spill] sm:$0xff] }
 0x124   :  { %v578_v51 = vadd.f32 1.1283791, %v577_v29  ;;  %vm3125_vm2 = vmor %vm595_vm0, %vm596_vm10  ;;  %vm3129_vm11 = vcmp.eq.f32.partialorder %v599_v16, 8.507059e+37  ;;  %v638_v11 = vsel %vm3117_vm1, %v2100_v46, %v634_v20  ;;  %v642_v21 = vor.u32 1.1754944e-38, %v641_v28 }
 0x125   :  { %vm3139_vm9 = vmor %vm555_vm6, %vm556_vm7  ;;  %v598_v5 = vsel %vm3125_vm2, %v3026_v42, %v594_v63  ;;  %v602_v1 = vor.u32 1.1754944e-38, %v601_v45  ;;  %vm640_vm10 = vcmp.eq.f32.partialorder %v639_v35, 8.507059e+37  ;;  %v672_v39 = vsub.f32 1.0, %v671_v17 }
 0x126   :  { %v4179_v49 = vand.u32 2147483647, %v2734_v47  ;;  %v558_v44 = vsel %vm3139_vm9, %v3030_v15, %v554_v52  ;;  %v619_v54 = vmul.f32 %v618_v58, %v2927_v4  ;;  %v643_v59 = vsel %vm640_vm10, %v642_v21, %v638_v11  ;;  %vm3161_vm6 = vmor %vm515_vm5, %vm516_vm4  ;;  %v4199_v11 = vld [vmem:[#allocation9_spill] sm:$0xff]  ;;  %v4200_v21 = vld [vmem:[#allocation15_spill] sm:$0xff] }
 0x127   :  { %v681_v57 = vand.u32 2147483648, %v3069_v27  ;;  %v658_v13 = vadd.f32 1.1283791, %v657_v56  ;;  %v673_v8 = vmul.f32 %v2102_v23, %v672_v39  ;;  %vm676_vm7 = vweird.f32 %v2102_v23  ;;  %v4197_v56 = vld [vmem:[#allocation27_spill] sm:$0xff] }
 0x128   :  { %vm3148_vm13 = vcmp.eq.f32.partialorder %v4179_v49, 8.507059e+37  ;;  %v679_v2 = vand.u32 2147483647, %v3069_v27  ;;  %v518_v4 = vsel %vm3161_vm6, %v3011_v19, %v3083_v10  ;;  %vm560_vm0 = vcmp.eq.f32.partialorder %v559_v34, 8.507059e+37 }
 0x129   :  { %v562_v15 = vor.u32 1.1754944e-38, %v561_v6  ;;  %v603_v53 = vsel %vm3129_vm11, %v602_v1, %v598_v5  ;;  %v4184_v29 = vand.u32 2147483647, %v2508_v32  ;;  %v579_v16 = vmul.f32 %v578_v51, %v2866_v30  ;;  %v4202_v5 = vld [vmem:[#allocation13_spill] sm:$0xff] }
 0x12a   :  { %v644_v7 = vmul.f32 %v643_v59, %v619_v54  ;;  %v674_v28 = vadd.f32 %v2102_v23, %v673_v8  ;;  %vm675_vm5 = vweird.f32 %v3069_v27  ;;  %v522_v19 = vor.u32 1.1754944e-38, %v521_v38  ;;  %v4190_v38 = vld [vmem:[#allocation20_spill] sm:$0xff]  ;;  %v4206_v8 = vld [vmem:[#allocation10_spill] sm:$0xff]  ;;  %v4211_v32 = vld [vmem:[#allocation21_spill] sm:$0xff] }
 0x12b   :  { %vm3174_vm4 = vcmp.eq.f32.partialorder %v4184_v29, 8.507059e+37  ;;  %v539_v10 = vmul.f32 %v3086_v40, %v2826_v22  ;;  %v563_v34 = vsel %vm560_vm0, %v562_v15, %v558_v44  ;;  %vm677_vm11 = vmor %vm675_vm5, %vm676_vm7  ;;  %v682_v63 = vor.u32 1.1754944e-38, %v681_v57  ;;  %v4204_v44 = vld [vmem:[#allocation26_spill] sm:$0xff]  ;;  %v4208_v15 = vld [vmem:[#allocation19_spill] sm:$0xff] }
 0x12c   :  { %vm4187_vm1 = vweird.f32 %v2734_v47  ;;  %v604_v30 = vmul.f32 %v603_v53, %v579_v16  ;;  %v659_v27 = vmul.f32 %v658_v13, %v2933_v41  ;;  %v678_v45 = vsel %vm677_vm11, %v2102_v23, %v674_v28  ;;  %v4205_v13 = vld [vmem:[#allocation4_spill] sm:$0xff] }
 0x12d   :  { %vm3188_vm2 = vmor %vm4187_vm1, %vm436_vm8  ;;  %vm680_vm9 = vcmp.eq.f32.partialorder %v679_v2, 8.507059e+37  ;;  %v483_v47 = vsel %vm3106_vm14, %v3067_v61, %v478_v33  ;;  %v523_v3 = vsel %vm3110_vm15, %v522_v19, %v518_v4  ;;  %v499_v40 = vmul.f32 %v3075_v26, %v4190_v38  ;;  %v4194_v33 = vld [vmem:[#allocation23_spill] sm:$0xff]  ;;  %v4207_v4 = vld [vmem:[#allocation16_spill] sm:$0xff] }
 0x12e   :  { %v438_v22 = vsel %vm3188_vm2, %v2779_v0, %v2860_v14  ;;  %v683_v41 = vsel %vm680_vm9, %v682_v63, %v678_v45  ;;  %v564_v35 = vmul.f32 %v563_v34, %v539_v10  ;;  %v2010_v52 = vclamps-f32 %v644_v7, 1.0  ;;  %v4191_v0 = vld [vmem:[#allocation12_spill] sm:$0xff] }
 0x12f   :  { %v684_v23 = vmul.f32 %v683_v41, %v659_v27  ;;  %v4192_v14 = vld [vmem:[#allocation24_spill] sm:$0xff]  ;;  %v314_v36 = vadd.f32 %v2880_v25, %v3052_v48  ;;  %vm316_vm3 = vweird.f32 %v2880_v25  ;;  %v459_v61 = vmul.f32 %v3054_v60, %v4193_v62 }
 0x130   :  { %v297_v12 = vmul.f32 %v4192_v14, %v4191_v0  ;;  %v443_v58 = vsel %vm3148_vm13, %v4194_v33, %v438_v22  ;;  %v524_v20 = vmul.f32 %v523_v3, %v499_v40  ;;  %v2009_v9 = vclamps-f32 %v604_v30, 1.0  ;;  %v4210_v10 = vld [vmem:[#allocation8_spill] sm:$0xff] }
 0x131   :  { %v2011_v26 = vclamps-f32 %v684_v23, 1.0  ;;  %vm315_vm8 = vweird.f32 %v2830_v43  ;;  %v319_v18 = vand.u32 2147483647, %v2830_v43  ;;  %v321_v6 = vand.u32 2147483648, %v2830_v43  ;;  %v4203_v43 = vld [vmem:[#allocation22_spill] sm:$0xff]  ;;  %v4213_v23 = vld [vmem:[#allocation11_spill] sm:$0xff] }
 0x132   :  { %v484_v37 = vmul.f32 %v483_v47, %v459_v61  ;;  %vm3222_vm14 = vmor %vm315_vm8, %vm316_vm3  ;;  %v264_v60 = vmul.f32 0.5, %v4197_v56  ;;  %v935_v51 = vadd.f32 1.0, %v2010_v52  ;;  %v2008_v50 = vclamps-f32 %v564_v35, 1.0  ;;  %v4212_v47 = vld [vmem:[#allocation18_spill] sm:$0xff] }
 0x133   :  { %v936_v17 = vadd.f32 1.0, %v2011_v26  ;;  %v4201_v31 = vsel %vm2679_vm12, %v4199_v11, %v4200_v21  ;;  %v444_v39 = vmul.f32 %v443_v58, %v4203_v43  ;;  %v298_v49 = vadd.f32 1.1283791, %v297_v12  ;;  %v965_v11 = vld [vmem:[%s4091_s3 + $0x30] sm:$0xff]  ;;  %v972_v21 = vld [vmem:[%s4091_s3 + $0x68] sm:$0xff] }
 0x134   :  { %v363_v1 = vsel %vm3174_vm4, %v4202_v5, %v4201_v31  ;;  %v318_v46 = vsel %vm3222_vm14, %v2880_v25, %v314_v36  ;;  %v263_v54 = vmul.f32 0.5, %v4204_v44  ;;  %v934_v57 = vadd.f32 1.0, %v2009_v9  ;;  %v4214_v36 = vld [vmem:[#allocation6_spill] sm:$0xff]  ;;  %v960_v31 = vld [vmem:[%s4091_s3 + $0x8] sm:$0xff]  ;;  %v961_v43 = vld [vmem:[%s4091_s3 + $0x10] sm:$0xff] }
 0x135   :  { %v952_v59 = vmul.f32 %v936_v17, %v264_v60  ;;  %v2007_v42 = vclamps-f32 %v524_v20, 1.0  ;;  %v339_v2 = vmul.f32 %v4206_v8, %v4205_v13  ;;  %v404_v53 = vmul.f32 %v4208_v15, %v4207_v4  ;;  %v4215_v20 = vld [vmem:[#allocation5_spill] sm:$0xff]  ;;  %v4217_v60 = vld [vmem:[#allocation7_spill] sm:$0xff]  ;;  %v999_v8 = vpop.permute.xlu2 %998  ;;  %v994_v15 = vpop.permute.xlu1 %993 }
 0x136   :  { %vm320_vm12 = vcmp.eq.f32.partialorder %v319_v18, 8.507059e+37  ;;  %v322_v29 = vor.u32 1.1754944e-38, %v321_v6  ;;  %v262_v16 = vmul.f32 0.5, %v4209_v24  ;;  %v951_v7 = vmul.f32 %v935_v51, %v263_v54  ;;  %v4216_v6 = vld [vmem:[#allocation3_spill] sm:$0xff]  ;;  %v966_v5 = vld [vmem:[%s4091_s3 + $0x38] sm:$0xff] }
 0x137   :  { %1077 = vmatpush.msra.mxu1 %v952_v59  ;;  %2047 = vmatpush.msra.mxu2 %v952_v59  ;;  %v933_v28 = vadd.f32 1.0, %v2008_v50  ;;  %v2006_v25 = vclamps-f32 %v484_v37, 1.0  ;;  %v364_v19 = vmul.f32 %v363_v1, %v339_v2  ;;  %v299_v34 = vmul.f32 %v298_v49, %v4210_v10  ;;  %v973_v1 = vld [vmem:[%s4091_s3 + $0x70] sm:$0xff]  ;;  %v974_v49 = vld [vmem:[%s4091_s3 + $0x78] sm:$0xff]  ;;  %v968_v44 = vld [vmem:[%s4091_s3 + $0x48] sm:$0xff] }
 0x138   :  { %v323_v63 = vsel %vm320_vm12, %v322_v29, %v318_v46  ;;  %2048 = vmatpush.msrb.mxu3 %v952_v59  ;;  %v261_v30 = vmul.f32 0.5, %v4211_v32  ;;  %v950_v27 = vmul.f32 %v934_v57, %v262_v16  ;;  %v932_v45 = vadd.f32 1.0, %v2007_v42  ;;  %v962_v46 = vld [vmem:[%s4091_s3 + $0x18] sm:$0xff]  ;;  %v963_v54 = vld [vmem:[%s4091_s3 + $0x20] sm:$0xff]  ;;  %v969_v59 = vld [vmem:[%s4091_s3 + $0x50] sm:$0xff] }
 0x139   :  { %1078 = vmatpush.msra.mxu1 %v951_v7  ;;  %2049 = vmatpush.msra.mxu2 %v951_v7  ;;  %v2005_v22 = vclamps-f32 %v444_v39, 1.0  ;;  %v260_v3 = vmul.f32 0.5, %v4212_v47  ;;  %v324_v41 = vmul.f32 %v323_v63, %v299_v34  ;;  %v931_v40 = vadd.f32 1.0, %v2006_v25  ;;  %v967_v39 = vld [vmem:[%s4091_s3 + $0x40] sm:$0xff]  ;;  %v964_v57 = vld [vmem:[%s4091_s3 + $0x28] sm:$0xff]  ;;  %v970_v42 = vld [vmem:[%s4091_s3 + $0x58] sm:$0xff] }
 0x13a   :  { %2050 = vmatpush.msrb.mxu3 %v951_v7  ;;  %v949_v38 = vmul.f32 %v933_v28, %v261_v30  ;;  %v2004_v35 = vclamps-f32 %v404_v53, 1.0  ;;  %v259_v52 = vmul.f32 0.5, %v4213_v23  ;;  %v2003_v12 = vclamps-f32 %v364_v19, 1.0  ;;  %v971_v13 = vld [vmem:[%s4091_s3 + $0x60] sm:$0xff]  ;;  %v3316_v19 = vpop.permute.xlu0 %1003 }
 0x13b   :  { %1079 = vmatpush.msra.mxu1 %v950_v27  ;;  %2051 = vmatpush.msra.mxu2 %v950_v27  ;;  %v948_v0 = vmul.f32 %v932_v45, %v260_v3  ;;  %v930_v14 = vadd.f32 1.0, %v2005_v22  ;;  %v258_v62 = vmul.f32 0.5, %v4214_v36  ;;  %v2002_v58 = vclamps-f32 %v324_v41, 1.0 }
 0x13c   :  { %2052 = vmatpush.msrb.mxu3 %v950_v27  ;;  %v947_v61 = vmul.f32 %v931_v40, %v259_v52  ;;  %v929_v33 = vadd.f32 1.0, %v2004_v35  ;;  %v257_v26 = vmul.f32 0.5, %v4215_v20  ;;  %v928_v18 = vadd.f32 1.0, %v2003_v12 }
 0x13d   :  { %1080 = vmatpush.msra.mxu1 %v949_v38  ;;  %2053 = vmatpush.msra.mxu2 %v949_v38  ;;  %v946_v9 = vmul.f32 %v930_v14, %v258_v62  ;;  %v256_v37 = vmul.f32 0.5, %v4216_v6  ;;  %v927_v56 = vadd.f32 1.0, %v2002_v58  ;;  %v255_v17 = vmul.f32 0.5, %v4217_v60  ;;  %v3301_v2 = vpop.permute.xlu2 %1013  ;;  %v3312_v28 = vpop.permute.xlu1 %1008 }
 0x13e   :  { %2054 = vmatpush.msrb.mxu3 %v949_v38  ;;  %v945_v48 = vmul.f32 %v929_v33, %v257_v26 }
 0x13f   :  { %1081 = vmatpush.msra.mxu1 %v948_v0  ;;  %2055 = vmatpush.msra.mxu2 %v948_v0  ;;  %v944_v51 = vmul.f32 %v928_v18, %v256_v37  ;;  %v943_v50 = vmul.f32 %v927_v56, %v255_v17 }
 0x140   :  { %2056 = vmatpush.msrb.mxu3 %v948_v0 }
 0x141   :  { %1082 = vmatpush.msra.mxu1 %v947_v61  ;;  %2057 = vmatpush.msra.mxu2 %v947_v61 }
 0x142   :  { %2058 = vmatpush.msrb.mxu3 %v947_v61  ;;  %v3320_v47 = vpop.permute.xlu0 %1018 }
 0x143   :  { %1083 = vmatpush.msra.mxu1 %v946_v9  ;;  %2059 = vmatpush.msra.mxu2 %v946_v9 }
 0x144   :  { %2060 = vmatpush.msrb.mxu3 %v946_v9 }
 0x145   :  { %1084 = vmatpush.msra.mxu1 %v945_v48  ;;  %2061 = vmatpush.msra.mxu2 %v945_v48  ;;  %v1029_v4 = vpop.permute.xlu2 %1028  ;;  %v1024_v30 = vpop.permute.xlu1 %1023 }
 0x146   :  { %2062 = vmatpush.msrb.mxu3 %v945_v48 }
 0x147   :  { %1085 = vmatpush.msra.mxu1 %v944_v51  ;;  %2063 = vmatpush.msra.mxu2 %v944_v51 }
 0x148   :  { %2064 = vmatpush.msrb.mxu3 %v944_v51 }
 0x149   :  { %1086 = vmatpush.msra.mxu1 %v943_v50  ;;  %2065 = vmatpush.msra.mxu2 %v943_v50 }
 0x14a   :  { %2066 = vmatpush.msrb.mxu3 %v943_v50  ;;  %1087 = vmatmul.f32.vlgmr.msra.gmra.mxu1 %v959_v55  ;;  %v3349_v20 = vpop.permute.xlu0 %1033 }
 0x14b   :  { %1105 = vmatmul.f32.vlgmr.msra.gmra.mxu2 %v965_v11  ;;  %1126 = vmatmul.f32.vlgmr.msrb.gmra.mxu3 %v972_v21 }
 0x14d   :  { %v3310_v7 = vpop.permute.xlu2 %1043 }
 0x152   :  { %1090 = vmatmul.f32.gmra.mxu1 %v960_v31 }
 0x153   :  { %1108 = vmatmul.f32.gmra.mxu2 %v966_v5  ;;  %1129 = vmatmul.f32.gmra.mxu3 %v973_v1 }
 0x155   :  { %v1059_v32 = vpop.permute.xlu2 %1058 }
 0x15a   :  { %1093 = vmatmul.f32.gmra.mxu1 %v961_v43 }
 0x15b   :  { %1111 = vmatmul.f32.gmra.mxu2 %v967_v39  ;;  %1132 = vmatmul.f32.gmra.mxu3 %v974_v49  ;;  %v3364_v39 = vpop.permute.xlu0 %1048 }
 0x162   :  { %1096 = vmatmul.f32.gmra.mxu1 %v962_v46 }
 0x163   :  { %1114 = vmatmul.f32.gmra.mxu2 %v968_v44 }
 0x16a   :  { %1099 = vmatmul.f32.gmra.mxu1 %v963_v54 }
 0x16b   :  { %1117 = vmatmul.f32.gmra.mxu2 %v969_v59 }
 0x172   :  { %1102 = vmatmul.f32.gmra.mxu1 %v964_v57 }
 0x173   :  { %1120 = vmatmul.f32.gmra.mxu2 %v970_v42 }
 0x17b   :  { %1123 = vmatmul.f32.gmra.mxu2 %v971_v13 }
 0x1c7   :  { %v1088_v53 = vpop.f32.mrf.mxu1 }
 0x1c8   :  { %v3303_v29 = vadd.f32 %v1088_v53, %v994_v15 }
 0x1ca   :  { %v3306_v24 = vmul.f32 0.70710677, %v3303_v29 }
 0x1cc   :  { %v1168_v16 = vmul.f32 %v3306_v24, %v3306_v24 }
 0x1ce   :  { %v3314_v25 = vmin.f32 %v1168_v16, 16.0  ;;  %v1106_v45 = vpop.f32.mrf.mxu2  ;;  %v1127_v22 = vpop.f32.mrf.mxu3 }
 0x1cf   :  { %v3322_v3 = vadd.f32 %v1106_v45, %v1024_v30  ;;  %v3324_v41 = vadd.f32 %v1127_v22, %v1059_v32  ;;  %v1091_v38 = vpop.f32.mrf.mxu1 }
 0x1d0   :  { %v1181_v10 = vmul.f32 3.8918573e-05, %v3314_v25  ;;  %v3333_v52 = vadd.f32 %v1091_v38, %v999_v8  ;;  %v1170_v26 = vmul.f32 2.1237322e-06, %v3314_v25  ;;  %v1064_v38 = vpop.permute.xlu0 %1063 }
 0x1d1   :  { %4218 = vst [vmem:[#allocation20_spill] sm:$0xff] %v3324_v41  ;;  %v3328_v35 = vmul.f32 0.70710677, %v3322_v3  ;;  %v3331_v23 = vmul.f32 0.70710677, %v3324_v41 }
 0x1d2   :  { %v1182_v34 = vadd.f32 0.001143296, %v1181_v10  ;;  %v3342_v62 = vmul.f32 0.70710677, %v3333_v52  ;;  %v1171_v56 = vadd.f32 0.00028619796, %v1170_v26 }
 0x1d3   :  { %v1408_v0 = vmul.f32 %v3328_v35, %v3328_v35  ;;  %v1688_v14 = vmul.f32 %v3331_v23, %v3331_v23 }
 0x1d4   :  { %v1183_v63 = vmul.f32 %v1182_v34, %v3314_v25  ;;  %v1208_v58 = vmul.f32 %v3342_v62, %v3342_v62  ;;  %v1172_v5 = vmul.f32 %v1171_v56, %v3314_v25 }
 0x1d5   :  { %v3339_v36 = vmin.f32 %v1408_v0, 16.0  ;;  %v3345_v33 = vmin.f32 %v1688_v14, 16.0 }
 0x1d6   :  { %v1184_v27 = vadd.f32 0.014752088, %v1183_v63  ;;  %v3355_v48 = vmin.f32 %v1208_v58, 16.0  ;;  %v1109_v51 = vpop.f32.mrf.mxu2  ;;  %v1173_v57 = vadd.f32 0.0036580483, %v1172_v5  ;;  %v1130_v32 = vpop.f32.mrf.mxu3 }
 0x1d7   :  { %v1421_v61 = vmul.f32 3.8918573e-05, %v3339_v36  ;;  %v1701_v37 = vmul.f32 3.8918573e-05, %v3345_v33  ;;  %v3359_v31 = vadd.f32 %v1109_v51, %v1029_v4  ;;  %v1410_v43 = vmul.f32 2.1237322e-06, %v3339_v36 }
 0x1d8   :  { %v1185_v40 = vmul.f32 %v1184_v27, %v3314_v25  ;;  %v1221_v50 = vmul.f32 3.8918573e-05, %v3355_v48  ;;  %v1690_v44 = vmul.f32 2.1237322e-06, %v3345_v33  ;;  %v1174_v10 = vmul.f32 %v1173_v57, %v3314_v25 }
 0x1d9   :  { %v1422_v18 = vadd.f32 0.001143296, %v1421_v61  ;;  %v1702_v55 = vadd.f32 0.001143296, %v1701_v37  ;;  %v3370_v59 = vmul.f32 0.70710677, %v3359_v31  ;;  %v3385_v14 = vadd.f32 %v1130_v32, %v1064_v38 }
 0x1da   :  { %v1186_v12 = vadd.f32 0.112945676, %v1185_v40  ;;  %v1222_v21 = vadd.f32 0.001143296, %v1221_v50  ;;  %v1411_v13 = vadd.f32 0.00028619796, %v1410_v43 }
 0x1db   :  { %v1423_v6 = vmul.f32 %v1422_v18, %v3339_v36  ;;  %v1703_v49 = vmul.f32 %v1702_v55, %v3345_v33  ;;  %v1691_v15 = vadd.f32 0.00028619796, %v1690_v44  ;;  %v1448_v16 = vmul.f32 %v3370_v59, %v3370_v59  ;;  %4219 = vst [vmem:[#allocation12_spill] sm:$0xff] %v3385_v14 }
 0x1dc   :  { %v1187_v9 = vmul.f32 %v1186_v12, %v3314_v25  ;;  %v1223_v54 = vmul.f32 %v1222_v21, %v3355_v48  ;;  %v1412_v34 = vmul.f32 %v1411_v13, %v3339_v36  ;;  %v1175_v40 = vadd.f32 0.05243302, %v1174_v10 }
 0x1dd   :  { %v1424_v17 = vadd.f32 0.014752088, %v1423_v6  ;;  %v1704_v8 = vadd.f32 0.014752088, %v1703_v49  ;;  %v1692_v27 = vmul.f32 %v1691_v15, %v3345_v33  ;;  %v3383_v22 = vmin.f32 %v1448_v16, 16.0 }
 0x1de   :  { %v1188_v60 = vadd.f32 0.4994258, %v1187_v9  ;;  %v1224_v53 = vadd.f32 0.014752088, %v1223_v54  ;;  %v1413_v0 = vadd.f32 0.0036580483, %v1412_v34  ;;  %v1176_v6 = vmul.f32 %v1175_v40, %v3314_v25 }
 0x1df   :  { %v1425_v11 = vmul.f32 %v1424_v17, %v3339_v36  ;;  %v1705_v63 = vmul.f32 %v1704_v8, %v3345_v33  ;;  %v1693_v26 = vadd.f32 0.0036580483, %v1692_v27  ;;  %v1461_v18 = vmul.f32 3.8918573e-05, %v3383_v22 }
 0x1e0   :  { %v1189_v1 = vmul.f32 %v1188_v60, %v3314_v25  ;;  %v1225_v45 = vmul.f32 %v1224_v53, %v3355_v48  ;;  %v1414_v37 = vmul.f32 %v1413_v0, %v3339_v36  ;;  %v1210_v56 = vmul.f32 2.1237322e-06, %v3355_v48 }
 0x1e1   :  { %v1426_v46 = vadd.f32 0.112945676, %v1425_v11  ;;  %v1706_v61 = vadd.f32 0.112945676, %v1705_v63  ;;  %v3397_v17 = vmul.f32 0.70710677, %v3385_v14  ;;  %v1694_v11 = vmul.f32 %v1693_v26, %v3345_v33 }
 0x1e2   :  { %v3372_v42 = vadd.f32 1.0, %v1189_v1  ;;  %v1226_v9 = vadd.f32 0.112945676, %v1225_v45  ;;  %v1462_v50 = vadd.f32 0.001143296, %v1461_v18 }
 0x1e3   :  { %v1427_v4 = vmul.f32 %v1426_v46, %v3339_v36  ;;  %v1707_v51 = vmul.f32 %v1706_v61, %v3345_v33  ;;  %v1177_v5 = vadd.f32 0.18741608, %v1176_v6  ;;  %v1415_v1 = vadd.f32 0.05243302, %v1414_v37  ;;  %v1094_v46 = vpop.f32.mrf.mxu1 }
 0x1e4   :  { %2103 = vrcp.f32 %v3372_v42  ;;  %v1227_v21 = vmul.f32 %v1226_v9, %v3355_v48  ;;  %v1211_v43 = vadd.f32 0.00028619796, %v1210_v56  ;;  %v1463_v49 = vmul.f32 %v1462_v50, %v3383_v22  ;;  %v3434_v56 = vpop.permute.xlu1 %1038 }
 0x1e5   :  { %v1428_v30 = vadd.f32 0.4994258, %v1427_v4  ;;  %v1728_v54 = vmul.f32 %v3397_v17, %v3397_v17  ;;  %v1708_v57 = vadd.f32 0.4994258, %v1707_v51  ;;  %v1695_v8 = vadd.f32 0.05243302, %v1694_v11 }
 0x1e6   :  { %v1464_v13 = vadd.f32 0.014752088, %v1463_v49  ;;  %v1228_v4 = vadd.f32 0.4994258, %v1227_v21  ;;  %v3409_v15 = vadd.f32 %v1094_v46, %v3316_v19  ;;  %v1178_v53 = vmul.f32 %v1177_v5, %v3314_v25 }
 0x1e7   :  { %v1429_v58 = vmul.f32 %v1428_v30, %v3339_v36  ;;  %v1416_v16 = vmul.f32 %v1415_v1, %v3339_v36  ;;  %v1212_v10 = vmul.f32 %v1211_v43, %v3355_v48  ;;  %v1450_v63 = vmul.f32 2.1237322e-06, %v3383_v22 }
 0x1e8   :  { %v3416_v32 = vmin.f32 %v1728_v54, 16.0  ;;  %v1709_v30 = vmul.f32 %v1708_v57, %v3345_v33  ;;  %v1465_v27 = vmul.f32 %v1464_v13, %v3383_v22  ;;  %v1696_v45 = vmul.f32 %v1695_v8, %v3345_v33  ;;  %v1112_v13 = vpop.f32.mrf.mxu2 }
 0x1e9   :  { %v3400_v55 = vadd.f32 1.0, %v1429_v58  ;;  %v1229_v19 = vmul.f32 %v1228_v4, %v3355_v48  ;;  %v3423_v25 = vmul.f32 0.70710677, %v3409_v15  ;;  %v1179_v38 = vadd.f32 1.1283791, %v1178_v53 }
 0x1ea   :  { %v3387_v12 = vpop.eup %2103  ;;  %v1417_v40 = vadd.f32 0.18741608, %v1416_v16  ;;  %v1213_v0 = vadd.f32 0.0036580483, %v1212_v10  ;;  %v1451_v26 = vadd.f32 0.00028619796, %v1450_v63  ;;  %vm1196_vm10 = vweird.f32 %v3372_v42 }
 0x1eb   :  { %v1192_v60 = vmul.f32 %v3387_v12, %v3372_v42  ;;  %2105 = vrcp.f32 %v3400_v55  ;;  %vm1197_vm15 = vweird.f32 %v3387_v12  ;;  %v1741_v9 = vmul.f32 3.8918573e-05, %v3416_v32 }
 0x1ec   :  { %v1202_v18 = vand.u32 2147483648, %v3372_v42  ;;  %v3432_v6 = vadd.f32 1.0, %v1709_v30  ;;  %v1466_v37 = vadd.f32 0.112945676, %v1465_v27  ;;  %v1697_v51 = vadd.f32 0.18741608, %v1696_v45  ;;  %vm3441_vm13 = vmor %vm1196_vm10, %vm1197_vm15 }
 0x1ed   :  { %v1193_v44 = vsub.f32 1.0, %v1192_v60  ;;  %v1200_v60 = vand.u32 2147483647, %v3372_v42  ;;  %v3437_v50 = vadd.f32 1.0, %v1229_v19  ;;  %v1248_v11 = vmul.f32 %v3423_v25, %v3423_v25 }
 0x1ee   :  { %v1418_v5 = vmul.f32 %v1417_v40, %v3339_v36  ;;  %v1214_v43 = vmul.f32 %v1213_v0, %v3355_v48  ;;  %v1452_v49 = vmul.f32 %v1451_v26, %v3383_v22  ;;  %v1742_v46 = vadd.f32 0.001143296, %v1741_v9 }
 0x1ef   :  { %v1194_v34 = vmul.f32 %v3387_v12, %v1193_v44  ;;  %v3453_v44 = vmin.f32 %v1248_v11, 16.0  ;;  %v1203_v54 = vor.u32 1.1754944e-38, %v1202_v18  ;;  %2107 = vrcp.f32 %v3432_v6 }
 0x1f0   :  { %v1467_v57 = vmul.f32 %v1466_v37, %v3383_v22  ;;  %v1730_v36 = vmul.f32 2.1237322e-06, %v3416_v32  ;;  %v1180_v8 = vmul.f32 %v1179_v38, %v3306_v24  ;;  %vm1201_vm6 = vcmp.eq.f32.partialorder %v1200_v60, 8.507059e+37  ;;  %v3482_v37 = vpop.permute.xlu1 %1053 }
 0x1f1   :  { %v3425_v61 = vpop.eup %2105  ;;  %v1195_v58 = vadd.f32 %v3387_v12, %v1194_v34  ;;  %v1698_v4 = vmul.f32 %v1697_v51, %v3345_v33  ;;  %2109 = vrcp.f32 %v3437_v50  ;;  %v1215_v16 = vadd.f32 0.05243302, %v1214_v43 }
 0x1f2   :  { %v1432_v1 = vmul.f32 %v3425_v61, %v3400_v55  ;;  %v1261_v10 = vmul.f32 3.8918573e-05, %v3453_v44  ;;  %v1419_v34 = vadd.f32 1.1283791, %v1418_v5  ;;  %v1453_v63 = vadd.f32 0.0036580483, %v1452_v49 }
 0x1f3   :  { %v1199_v42 = vsel %vm3441_vm13, %v3387_v12, %v1195_v58  ;;  %v1743_v30 = vmul.f32 %v1742_v46, %v3416_v32  ;;  %v3464_v27 = vadd.f32 %v1112_v13, %v3349_v20  ;;  %v1136_v45 = vmul.f32 0.5, %v3303_v29 }
 0x1f4   :  { %v1204_v12 = vsel %vm1201_vm6, %v1203_v54, %v1199_v42  ;;  %v1433_v53 = vsub.f32 1.0, %v1432_v1  ;;  %v1468_v24 = vadd.f32 0.4994258, %v1467_v57  ;;  %v1731_v19 = vadd.f32 0.00028619796, %v1730_v36 }
 0x1f5   :  { %v1205_v38 = vmul.f32 %v1204_v12, %v1180_v8  ;;  %v3468_v33 = vmul.f32 0.5, %v3322_v3  ;;  %v3471_v40 = vmul.f32 0.5, %v3333_v52  ;;  %v3474_v0 = vmul.f32 0.5, %v3359_v31  ;;  %v3476_v58 = vpop.eup %2107 }
 0x1f6   :  { %v1434_v26 = vmul.f32 %v3425_v61, %v1433_v53  ;;  %v1699_v20 = vadd.f32 1.1283791, %v1698_v4  ;;  %v1216_v9 = vmul.f32 %v1215_v16, %v3355_v48  ;;  %v1262_v29 = vadd.f32 0.001143296, %v1261_v10 }
 0x1f7   :  { %v3480_v18 = vpop.eup %2109  ;;  %v1420_v3 = vmul.f32 %v1419_v34, %v3328_v35  ;;  %v1454_v52 = vmul.f32 %v1453_v63, %v3383_v22  ;;  %v1744_v60 = vadd.f32 0.014752088, %v1743_v30  ;;  %v3487_v31 = vmul.f32 0.70710677, %v3464_v27 }
 0x1f8   :  { %vm1436_vm7 = vweird.f32 %v3400_v55  ;;  %v1469_v51 = vmul.f32 %v1468_v24, %v3383_v22  ;;  %v1732_v11 = vmul.f32 %v1731_v19, %v3416_v32  ;;  %v1263_v21 = vmul.f32 %v1262_v29, %v3453_v44  ;;  %v1133_v29 = vpop.f32.mrf.mxu3 }
 0x1f9   :  { %v2018_v5 = vclamps-f32 %v1205_v38, 1.0  ;;  %v1442_v1 = vand.u32 2147483648, %v3400_v55  ;;  %v1712_v35 = vmul.f32 %v3476_v58, %v3432_v6  ;;  %v1488_v43 = vmul.f32 %v3487_v31, %v3487_v31 }
 0x1fa   :  { %v1435_v42 = vadd.f32 %v3425_v61, %v1434_v26  ;;  %vm1437_vm0 = vweird.f32 %v3425_v61  ;;  %v1232_v49 = vmul.f32 %v3480_v18, %v3437_v50  ;;  %v1264_v46 = vadd.f32 0.014752088, %v1263_v21 }
 0x1fb   :  { %v1440_v54 = vand.u32 2147483647, %v3400_v55  ;;  %v3504_v57 = vmul.f32 %v1699_v20, %v3331_v23  ;;  %v1455_v36 = vadd.f32 0.05243302, %v1454_v52  ;;  %v1745_v13 = vmul.f32 %v1744_v60, %v3416_v32  ;;  %vm3512_vm4 = vmor %vm1436_vm7, %vm1437_vm0  ;;  %v1859_v52 = vpop.permute.xlu2 %1858 }
 0x1fc   :  { %v1217_v8 = vadd.f32 0.18741608, %v1216_v9  ;;  %v3507_v4 = vadd.f32 1.0, %v1469_v51  ;;  %v1733_v12 = vadd.f32 0.0036580483, %v1732_v11  ;;  %v1265_v53 = vmul.f32 %v1264_v46, %v3453_v44  ;;  %v1069_v51 = vpop.permute.xlu1 %1068 }
 0x1fd   :  { %v1808_v16 = vadd.f32 1.0, %v2018_v5  ;;  %v1443_v34 = vor.u32 1.1754944e-38, %v1442_v1  ;;  %v1713_v63 = vsub.f32 1.0, %v1712_v35  ;;  %v3516_v23 = vmin.f32 %v1488_v43, 16.0 }
 0x1fe   :  { %v1439_v30 = vsel %vm3512_vm4, %v3425_v61, %v1435_v42  ;;  %v1720_v24 = vand.u32 2147483647, %v3432_v6  ;;  %v1233_v19 = vsub.f32 1.0, %v1232_v49  ;;  %v1266_v38 = vadd.f32 0.112945676, %v1265_v53  ;;  %v1097_v49 = vpop.f32.mrf.mxu1 }
 0x1ff   :  { %v1722_v26 = vand.u32 2147483648, %v3432_v6  ;;  %v1456_v55 = vmul.f32 %v1455_v36, %v3383_v22  ;;  %v1746_v20 = vadd.f32 0.112945676, %v1745_v13  ;;  %v1501_v9 = vmul.f32 3.8918573e-05, %v3516_v23 }
 0x200   :  { %vm1441_vm5 = vcmp.eq.f32.partialorder %v1440_v54, 8.507059e+37  ;;  %v1218_v60 = vmul.f32 %v1217_v8, %v3355_v48  ;;  %2111 = vrcp.f32 %v3507_v4  ;;  %v1734_v61 = vmul.f32 %v1733_v12, %v3416_v32 }
 0x201   :  { %v1444_v11 = vsel %vm1441_vm5, %v1443_v34, %v1439_v30  ;;  %v1714_v21 = vmul.f32 %v3476_v58, %v1713_v63  ;;  %vm1716_vm11 = vweird.f32 %v3432_v6  ;;  %v1502_v5 = vadd.f32 0.001143296, %v1501_v9 }
 0x202   :  { %v1824_v1 = vmul.f32 %v1808_v16, %v1136_v45  ;;  %v1234_v35 = vmul.f32 %v3480_v18, %v1233_v19  ;;  %v1267_v43 = vmul.f32 %v1266_v38, %v3453_v44  ;;  %v3532_v42 = vadd.f32 %v1133_v29, %v1069_v51 }
 0x203   :  { %vm3534_vm1 = vcmp.eq.f32.partialorder %v1720_v24, 8.507059e+37  ;;  %v1723_v46 = vor.u32 1.1754944e-38, %v1722_v26  ;;  %v1457_v54 = vadd.f32 0.18741608, %v1456_v55  ;;  %v1747_v36 = vmul.f32 %v1746_v20, %v3416_v32  ;;  %v3576_v51 = vpop.permute.xlu2 %1873 }
 0x204   :  { %4224 = vst [vmem:[#allocation24_spill] sm:$0xff] %v3532_v42  ;;  %v1445_v13 = vmul.f32 %v1444_v11, %v1420_v3  ;;  %v1219_v8 = vadd.f32 1.1283791, %v1218_v60  ;;  %v1735_v12 = vadd.f32 0.05243302, %v1734_v61  ;;  %v1715_v53 = vadd.f32 %v3476_v58, %v1714_v21 }
 0x205   :  { %v1250_v45 = vmul.f32 2.1237322e-06, %v3453_v44  ;;  %vm1717_vm2 = vweird.f32 %v3476_v58  ;;  %v1503_v16 = vmul.f32 %v1502_v5, %v3516_v23  ;;  %v3544_v10 = vadd.f32 %v1097_v49, %v3312_v28 }
 0x206   :  { %v3546_v34 = vpop.eup %2111  ;;  %v1235_v63 = vadd.f32 %v3480_v18, %v1234_v35  ;;  %vm1237_vm9 = vweird.f32 %v3480_v18  ;;  %v1268_v3 = vadd.f32 0.4994258, %v1267_v43  ;;  %v3551_v30 = vmul.f32 0.70710677, %v3532_v42  ;;  %vm3558_vm3 = vmor %vm1716_vm11, %vm1717_vm2 }
 0x207   :  { %v1240_v24 = vand.u32 2147483647, %v3437_v50  ;;  %v1242_v19 = vand.u32 2147483648, %v3437_v50  ;;  %v1458_v38 = vmul.f32 %v1457_v54, %v3383_v22  ;;  %v1748_v26 = vadd.f32 0.4994258, %v1747_v36  ;;  %v1115_v36 = vpop.f32.mrf.mxu2 }
 0x208   :  { %v2024_v55 = vclamps-f32 %v1445_v13, 1.0  ;;  %vm1236_vm8 = vweird.f32 %v3437_v50  ;;  %v1736_v20 = vmul.f32 %v1735_v12, %v3416_v32  ;;  %v1251_v9 = vadd.f32 0.00028619796, %v1250_v45 }
 0x209   :  { %v1719_v29 = vsel %vm3558_vm3, %v3476_v58, %v1715_v53  ;;  %vm3567_vm14 = vmor %vm1236_vm8, %vm1237_vm9  ;;  %v1472_v22 = vmul.f32 %v3546_v34, %v3507_v4  ;;  %v1504_v6 = vadd.f32 0.014752088, %v1503_v16  ;;  %v3574_v61 = vmul.f32 0.70710677, %v3544_v10 }
 0x20a   :  { %v3578_v50 = vmul.f32 %v1859_v52, %v1824_v1  ;;  %v1239_v11 = vsel %vm3567_vm14, %v3480_v18, %v1235_v63  ;;  %v1269_v58 = vmul.f32 %v1268_v3, %v3453_v44  ;;  %v1768_v21 = vmul.f32 %v3551_v30, %v3551_v30 }
 0x20b   :  { %vm1241_vm12 = vcmp.eq.f32.partialorder %v1240_v24, 8.507059e+37  ;;  %v1243_v5 = vor.u32 1.1754944e-38, %v1242_v19  ;;  %v1459_v35 = vadd.f32 1.1283791, %v1458_v38  ;;  %v1749_v43 = vmul.f32 %v1748_v26, %v3416_v32  ;;  %v1889_v60 = vpop.permute.xlu2 %1888 }
 0x20c   :  { %v1814_v49 = vadd.f32 1.0, %v2024_v55  ;;  %v1724_v54 = vsel %vm3534_vm1, %v1723_v46, %v1719_v29  ;;  %v1737_v52 = vadd.f32 0.18741608, %v1736_v20  ;;  %v1252_v1 = vmul.f32 %v1251_v9, %v3453_v44 }
 0x20d   :  { %v1244_v13 = vsel %vm1241_vm12, %v1243_v5, %v1239_v11  ;;  %v1473_v18 = vsub.f32 1.0, %v1472_v22  ;;  %v1505_v12 = vmul.f32 %v1504_v6, %v3516_v23  ;;  %v1288_v45 = vmul.f32 %v3574_v61, %v3574_v61 }
 0x20e   :  { %v1220_v53 = vmul.f32 %v1219_v8, %v3342_v62  ;;  %v3594_v16 = vadd.f32 1.0, %v1269_v58  ;;  %v1490_v63 = vmul.f32 2.1237322e-06, %v3516_v23  ;;  %v3597_v3 = vmin.f32 %v1768_v21, 16.0  ;;  %v1100_v58 = vpop.f32.mrf.mxu1 }
 0x20f   :  { %v3599_v48 = vadd.f32 1.0, %v1749_v43  ;;  %v3602_v46 = vmul.f32 0.5, %v3409_v15  ;;  %v3604_v24 = vmin.f32 %v1288_v45, 16.0  ;;  %v3607_v19 = vadd.f32 %v1115_v36, %v3434_v56 }
 0x210   :  { %v3610_v38 = vmul.f32 %v1724_v54, %v3504_v57  ;;  %v1245_v62 = vmul.f32 %v1244_v13, %v1220_v53  ;;  %v3613_v8 = vmul.f32 %v1459_v35, %v3370_v59  ;;  %v1253_v26 = vadd.f32 0.0036580483, %v1252_v1 }
 0x211   :  { %v1830_v55 = vmul.f32 %v1814_v49, %v3468_v33  ;;  %v1474_v28 = vmul.f32 %v3546_v34, %v1473_v18  ;;  %v1738_v15 = vmul.f32 %v1737_v52, %v3416_v32  ;;  %v1506_v20 = vadd.f32 0.112945676, %v1505_v12 }
 0x212   :  { %4231 = vst [vmem:[#allocation14_spill] sm:$0xff] %v3610_v38  ;;  %2113 = vrcp.f32 %v3594_v16  ;;  %v1491_v9 = vadd.f32 0.00028619796, %v1490_v63  ;;  %v1781_v56 = vmul.f32 3.8918573e-05, %v3597_v3  ;;  %v3624_v59 = vmul.f32 0.5, %v3464_v27 }
 0x213   :  { %v1301_v57 = vmul.f32 3.8918573e-05, %v3604_v24  ;;  %v1480_v29 = vand.u32 2147483647, %v3507_v4  ;;  %2115 = vrcp.f32 %v3599_v48  ;;  %v3627_v33 = vmul.f32 0.70710677, %v3607_v19 }
 0x214   :  { %v2019_v32 = vclamps-f32 %v1245_v62, 1.0  ;;  %v1254_v22 = vmul.f32 %v1253_v26, %v3453_v44  ;;  %v1770_v6 = vmul.f32 2.1237322e-06, %v3597_v3  ;;  %v3631_v21 = vmul.f32 %v1889_v60, %v1830_v55 }
 0x215   :  { %v1302_v11 = vadd.f32 0.001143296, %v1301_v57  ;;  %v1482_v5 = vand.u32 2147483648, %v3507_v4  ;;  %v1739_v35 = vadd.f32 1.1283791, %v1738_v15  ;;  %v1507_v43 = vmul.f32 %v1506_v20, %v3516_v23 }
 0x216   :  { %v1475_v27 = vadd.f32 %v3546_v34, %v1474_v28  ;;  %vm1477_vm15 = vweird.f32 %v3546_v34  ;;  %v1492_v49 = vmul.f32 %v1491_v9, %v3516_v23  ;;  %v1782_v54 = vadd.f32 0.001143296, %v1781_v56 }
 0x217   :  { %vm1476_vm10 = vweird.f32 %v3507_v4  ;;  %v1303_v52 = vmul.f32 %v1302_v11, %v3604_v24  ;;  %v1528_v1 = vmul.f32 %v3627_v33, %v3627_v33  ;;  %v3643_v36 = vadd.f32 %v1100_v58, %v3301_v2 }
 0x218   :  { %v3645_v13 = vpop.eup %2113  ;;  %v1809_v18 = vadd.f32 1.0, %v2019_v32  ;;  %vm3647_vm13 = vcmp.eq.f32.partialorder %v1480_v29, 8.507059e+37  ;;  %v1255_v45 = vadd.f32 0.05243302, %v1254_v22  ;;  %v1771_v53 = vadd.f32 0.00028619796, %v1770_v6  ;;  %vm3653_vm6 = vmor %vm1476_vm10, %vm1477_vm15 }
 0x219   :  { %v3651_v63 = vpop.eup %2115  ;;  %v1483_v62 = vor.u32 1.1754944e-38, %v1482_v5  ;;  %v1508_v26 = vadd.f32 0.4994258, %v1507_v43  ;;  %v1304_v55 = vadd.f32 0.014752088, %v1303_v52  ;;  %v3657_v2 = vmin.f32 %v1528_v1, 16.0 }
 0x21a   :  { %v1479_v28 = vsel %vm3653_vm6, %v3546_v34, %v1475_v27  ;;  %v3663_v15 = vmul.f32 %v1739_v35, %v3397_v17  ;;  %v1493_v20 = vadd.f32 0.0036580483, %v1492_v49  ;;  %v1783_v9 = vmul.f32 %v1782_v54, %v3597_v3  ;;  %v1864_v49 = vpop.permute.xlu0 %1863 }
 0x21b   :  { %v1272_v56 = vmul.f32 %v3645_v13, %v3594_v16  ;;  %v1290_v57 = vmul.f32 2.1237322e-06, %v3604_v24  ;;  %v1305_v29 = vmul.f32 %v1304_v55, %v3604_v24  ;;  %v3671_v60 = vmul.f32 0.70710677, %v3643_v36 }
 0x21c   :  { %v1825_v32 = vmul.f32 %v1809_v18, %v3471_v40  ;;  %v1752_v34 = vmul.f32 %v3651_v63, %v3599_v48  ;;  %v1256_v17 = vmul.f32 %v1255_v45, %v3453_v44  ;;  %v1541_v22 = vmul.f32 3.8918573e-05, %v3657_v2 }
 0x21d   :  { %v1484_v6 = vsel %vm3647_vm13, %v1483_v62, %v1479_v28  ;;  %v1509_v11 = vmul.f32 %v1508_v26, %v3516_v23  ;;  %v1772_v58 = vmul.f32 %v1771_v53, %v3597_v3  ;;  %v1306_v5 = vadd.f32 0.112945676, %v1305_v29 }
 0x21e   :  { %v1762_v43 = vand.u32 2147483648, %v3599_v48  ;;  %v1494_v40 = vmul.f32 %v1493_v20, %v3516_v23  ;;  %v1784_v27 = vadd.f32 0.014752088, %v1783_v9  ;;  %v1273_v54 = vsub.f32 1.0, %v1272_v56 }
 0x21f   :  { %v1291_v52 = vadd.f32 0.00028619796, %v1290_v57  ;;  %v1307_v1 = vmul.f32 %v1306_v5, %v3604_v24  ;;  %v1328_v18 = vmul.f32 %v3671_v60, %v3671_v60  ;;  %v1937_v12 = vmul.f32 %v1864_v49, %v1825_v32 }
 0x220   :  { %v1485_v45 = vmul.f32 %v1484_v6, %v3613_v8  ;;  %v1257_v53 = vadd.f32 0.18741608, %v1256_v17  ;;  %v1542_v4 = vadd.f32 0.001143296, %v1541_v22  ;;  %v1753_v62 = vsub.f32 1.0, %v1752_v34 }
 0x221   :  { %v3689_v26 = vadd.f32 1.0, %v1509_v11  ;;  %v1773_v55 = vadd.f32 0.0036580483, %v1772_v58  ;;  %v1308_v28 = vadd.f32 0.4994258, %v1307_v1  ;;  %v3691_v20 = vor.u32 1.1754944e-38, %v1762_v43 }
 0x222   :  { %v1495_v9 = vadd.f32 0.05243302, %v1494_v40  ;;  %v1785_v56 = vmul.f32 %v1784_v27, %v3597_v3  ;;  %v1543_v57 = vmul.f32 %v1542_v4, %v3657_v2  ;;  %v1274_v29 = vmul.f32 %v3645_v13, %v1273_v54  ;;  %v1118_v40 = vpop.f32.mrf.mxu2 }
 0x223   :  { %v1292_v32 = vmul.f32 %v1291_v52, %v3604_v24  ;;  %v1309_v8 = vmul.f32 %v1308_v28, %v3604_v24  ;;  %v3698_v17 = vmin.f32 %v1328_v18, 16.0  ;;  %v3701_v34 = vadd.f32 %v1937_v12, %v3578_v50 }
 0x224   :  { %v1258_v22 = vmul.f32 %v1257_v53, %v3453_v44  ;;  %v3705_v6 = vmul.f32 0.5, %v3544_v10  ;;  %v1544_v11 = vadd.f32 0.014752088, %v1543_v57  ;;  %v2025_v58 = vclamps-f32 %v1485_v45, 1.0 }
 0x225   :  { %v1754_v5 = vmul.f32 %v3651_v63, %v1753_v62  ;;  %2117 = vrcp.f32 %v3689_v26  ;;  %v1774_v43 = vmul.f32 %v1773_v55, %v3597_v3  ;;  %vm1277_vm7 = vweird.f32 %v3645_v13 }
 0x226   :  { %v1496_v27 = vmul.f32 %v1495_v9, %v3516_v23  ;;  %v3712_v50 = vadd.f32 1.0, %v1309_v8  ;;  %v1545_v44 = vmul.f32 %v1544_v11, %v3657_v2  ;;  %v1275_v10 = vadd.f32 %v3645_v13, %v1274_v29 }
 0x227   :  { %v1786_v49 = vadd.f32 0.112945676, %v1785_v56  ;;  %v1293_v54 = vadd.f32 0.0036580483, %v1292_v32  ;;  %v1341_v52 = vmul.f32 3.8918573e-05, %v3698_v17  ;;  %v3720_v45 = vadd.f32 %v1118_v40, %v3310_v7  ;;  %v1103_v40 = vpop.f32.mrf.mxu1 }
 0x228   :  { %v1259_v1 = vadd.f32 1.1283791, %v1258_v22  ;;  %v1282_v18 = vand.u32 2147483648, %v3594_v16  ;;  %v1530_v12 = vmul.f32 2.1237322e-06, %v3657_v2  ;;  %vm1756_vm0 = vweird.f32 %v3599_v48 }
 0x229   :  { %vm1276_vm4 = vweird.f32 %v3594_v16  ;;  %v1280_v53 = vand.u32 2147483647, %v3594_v16  ;;  %2119 = vrcp.f32 %v3712_v50  ;;  %v1546_v4 = vadd.f32 0.112945676, %v1545_v44 }
 0x22a   :  { %v1815_v62 = vadd.f32 1.0, %v2025_v58  ;;  %vm1757_vm5 = vweird.f32 %v3651_v63  ;;  %vm3729_vm11 = vmor %vm1276_vm4, %vm1277_vm7  ;;  %v1775_v7 = vadd.f32 0.05243302, %v1774_v43  ;;  %v1342_v28 = vadd.f32 0.001143296, %v1341_v52 }
 0x22b   :  { %v3733_v9 = vpop.eup %2117  ;;  %v1279_v16 = vsel %vm3729_vm11, %v3645_v13, %v1275_v10  ;;  %v1497_v56 = vadd.f32 0.18741608, %v1496_v27  ;;  %v1787_v57 = vmul.f32 %v1786_v49, %v3597_v3  ;;  %v1294_v29 = vmul.f32 %v1293_v54, %v3604_v24  ;;  %vm3770_vm2 = vmor %vm1756_vm0, %vm1757_vm5 }
 0x22c   :  { %v1283_v32 = vor.u32 1.1754944e-38, %v1282_v18  ;;  %v1531_v8 = vadd.f32 0.00028619796, %v1530_v12  ;;  %v1343_v22 = vmul.f32 %v1342_v28, %v3698_v17  ;;  %v3742_v11 = vmul.f32 0.70710677, %v3720_v45 }
 0x22d   :  { %v3745_v58 = vadd.f32 %v3651_v63, %v1754_v5  ;;  %vm1281_vm1 = vcmp.eq.f32.partialorder %v1280_v53, 8.507059e+37  ;;  %v1547_v43 = vmul.f32 %v1546_v4, %v3657_v2  ;;  %v1330_v13 = vmul.f32 2.1237322e-06, %v3698_v17 }
 0x22e   :  { %v1260_v27 = vmul.f32 %v1259_v1, %v3423_v25  ;;  %v1284_v44 = vsel %vm1281_vm1, %v1283_v32, %v1279_v16  ;;  %v1512_v10 = vmul.f32 %v3733_v9, %v3689_v26  ;;  %v1344_v49 = vadd.f32 0.014752088, %v1343_v22 }
 0x22f   :  { %v3752_v54 = vpop.eup %2119  ;;  %v1498_v52 = vmul.f32 %v1497_v56, %v3516_v23  ;;  %v1776_v5 = vmul.f32 %v1775_v7, %v3597_v3  ;;  %v1788_v18 = vadd.f32 0.4994258, %v1787_v57  ;;  %v1295_v12 = vadd.f32 0.05243302, %v1294_v29 }
 0x230   :  { %v1532_v53 = vmul.f32 %v1531_v8, %v3657_v2  ;;  %v1345_v4 = vmul.f32 %v1344_v49, %v3698_v17  ;;  %v1568_v25 = vmul.f32 %v3742_v11, %v3742_v11  ;;  %v3761_v1 = vadd.f32 %v1103_v40, %v3320_v47 }
 0x231   :  { %v3764_v55 = vmul.f32 %v1815_v62, %v3474_v0  ;;  %v1285_v28 = vmul.f32 %v1284_v44, %v1260_v27  ;;  %v1548_v16 = vadd.f32 0.4994258, %v1547_v43  ;;  %v1331_v23 = vadd.f32 0.00028619796, %v1330_v13  ;;  %v1121_v27 = vpop.f32.mrf.mxu2 }
 0x232   :  { %v1513_v56 = vsub.f32 1.0, %v1512_v10  ;;  %v1312_v57 = vmul.f32 %v3752_v54, %v3712_v50  ;;  %v1346_v47 = vadd.f32 0.112945676, %v1345_v4  ;;  %v3776_v29 = vmin.f32 %v1568_v25, 16.0 }
 0x233   :  { %v1499_v62 = vadd.f32 1.1283791, %v1498_v52  ;;  %v3782_v32 = vadd.f32 0.18741608, %v1776_v5  ;;  %v1296_v8 = vmul.f32 %v1295_v12, %v3604_v24  ;;  %vm1516_vm9 = vweird.f32 %v3689_v26 }
 0x234   :  { %v1520_v22 = vand.u32 2147483647, %v3689_v26  ;;  %v1789_v43 = vmul.f32 %v1788_v18, %v3597_v3  ;;  %v1533_v13 = vadd.f32 0.0036580483, %v1532_v53  ;;  %v3789_v40 = vmul.f32 0.70710677, %v3761_v1 }
 0x235   :  { %v2020_v44 = vclamps-f32 %v1285_v28, 1.0  ;;  %v1549_v10 = vmul.f32 %v1548_v16, %v3657_v2  ;;  %v1332_v49 = vmul.f32 %v1331_v23, %v3698_v17  ;;  %v1347_v52 = vmul.f32 %v1346_v47, %v3698_v17 }
 0x236   :  { %v1514_v5 = vmul.f32 %v3733_v9, %v1513_v56  ;;  %v1522_v12 = vand.u32 2147483648, %v3689_v26  ;;  %v1313_v4 = vsub.f32 1.0, %v1312_v57  ;;  %v1581_v25 = vmul.f32 3.8918573e-05, %v3776_v29 }
 0x237   :  { %vm1517_vm3 = vweird.f32 %v3733_v9  ;;  %v1297_v18 = vadd.f32 0.18741608, %v1296_v8  ;;  %v1348_v53 = vadd.f32 0.4994258, %v1347_v52  ;;  %v3799_v0 = vadd.f32 %v1121_v27, %v3364_v39 }
 0x238   :  { %v3801_v28 = vadd.f32 1.0, %v1789_v43  ;;  %v1534_v16 = vmul.f32 %v1533_v13, %v3657_v2  ;;  %v1582_v23 = vadd.f32 0.001143296, %v1581_v25  ;;  %v1368_v56 = vmul.f32 %v3789_v40, %v3789_v40  ;;  %vm3833_vm14 = vmor %vm1516_vm9, %vm1517_vm3 }
 0x239   :  { %4240 = vst [vmem:[#allocation23_spill] sm:$0xff] %v3799_v0  ;;  %v1810_v47 = vadd.f32 1.0, %v2020_v44  ;;  %v3806_v35 = vadd.f32 1.0, %v1549_v10  ;;  %v1333_v57 = vadd.f32 0.0036580483, %v1332_v49  ;;  %v1349_v42 = vmul.f32 %v1348_v53, %v3698_v17 }
 0x23a   :  { %v1515_v8 = vadd.f32 %v3733_v9, %v1514_v5  ;;  %vm3810_vm8 = vcmp.eq.f32.partialorder %v1520_v22, 8.507059e+37  ;;  %v1314_v39 = vmul.f32 %v3752_v54, %v1313_v4  ;;  %v1583_v43 = vmul.f32 %v1582_v23, %v3776_v29 }
 0x23b   :  { %v3816_v13 = vmin.f32 %v1368_v56, 16.0  ;;  %v1523_v27 = vor.u32 1.1754944e-38, %v1522_v12  ;;  %v1298_v44 = vmul.f32 %v1297_v18, %v3604_v24  ;;  %v3820_v10 = vmul.f32 0.5, %v3643_v36 }
 0x23c   :  { %v3823_v49 = vmul.f32 0.70710677, %v3799_v0  ;;  %2121 = vrcp.f32 %v3801_v28  ;;  %v1535_v22 = vadd.f32 0.05243302, %v1534_v16  ;;  %v3826_v5 = vadd.f32 1.0, %v1349_v42 }
 0x23d   :  { %v1584_v25 = vadd.f32 0.014752088, %v1583_v43  ;;  %v1826_v4 = vmul.f32 %v1810_v47, %v3602_v46  ;;  %2123 = vrcp.f32 %v3806_v35  ;;  %v1334_v36 = vmul.f32 %v1333_v57, %v3698_v17  ;;  %v1869_v47 = vpop.permute.xlu1 %1868 }
 0x23e   :  { %v1370_v12 = vmul.f32 2.1237322e-06, %v3816_v13  ;;  %v1519_v42 = vsel %vm3833_vm14, %v3733_v9, %v1515_v8  ;;  %v1315_v46 = vadd.f32 %v3752_v54, %v1314_v39  ;;  %vm1317_vm12 = vweird.f32 %v3752_v54 }
 0x23f   :  { %2125 = vrcp.f32 %v3826_v5  ;;  %v1299_v26 = vadd.f32 1.1283791, %v1298_v44  ;;  %v1322_v18 = vand.u32 2147483648, %v3712_v50  ;;  %v1585_v53 = vmul.f32 %v1584_v25, %v3776_v29 }
 0x240   :  { %v1608_v16 = vmul.f32 %v3823_v49, %v3823_v49  ;;  %vm1316_vm15 = vweird.f32 %v3712_v50  ;;  %v1320_v23 = vand.u32 2147483647, %v3712_v50  ;;  %v1536_v9 = vmul.f32 %v1535_v22, %v3657_v2 }
 0x241   :  { %v1381_v56 = vmul.f32 3.8918573e-05, %v3816_v13  ;;  %v1500_v57 = vmul.f32 %v1499_v62, %v3487_v31  ;;  %vm3855_vm10 = vmor %vm1316_vm15, %vm1317_vm12  ;;  %v1335_v39 = vadd.f32 0.05243302, %v1334_v36  ;;  %v1586_v43 = vadd.f32 0.112945676, %v1585_v53 }
 0x242   :  { %v1371_v44 = vadd.f32 0.00028619796, %v1370_v12  ;;  %v3859_v25 = vpop.eup %2121  ;;  %v1938_v24 = vmul.f32 %v1869_v47, %v1826_v4  ;;  %v1319_v50 = vsel %vm3855_vm10, %v3752_v54, %v1315_v46  ;;  %v1570_v22 = vmul.f32 2.1237322e-06, %v3776_v29 }
 0x243   :  { %v1382_v14 = vadd.f32 0.001143296, %v1381_v56  ;;  %v3865_v41 = vpop.eup %2123  ;;  %v1524_v31 = vsel %vm3810_vm8, %v1523_v27, %v1519_v42  ;;  %v1323_v62 = vor.u32 1.1754944e-38, %v1322_v18  ;;  %v1587_v36 = vmul.f32 %v1586_v43, %v3776_v29 }
 0x244   :  { %v3870_v53 = vmin.f32 %v1608_v16, 16.0  ;;  %v1300_v4 = vmul.f32 %v1299_v26, %v3574_v61  ;;  %vm1321_vm13 = vcmp.eq.f32.partialorder %v1320_v23, 8.507059e+37  ;;  %v1537_v47 = vadd.f32 0.18741608, %v1536_v9 }
 0x245   :  { %v3872_v12 = vpop.eup %2125  ;;  %v1383_v54 = vmul.f32 %v1382_v14, %v3816_v13  ;;  %v1324_v46 = vsel %vm1321_vm13, %v1323_v62, %v1319_v50  ;;  %v1336_v56 = vmul.f32 %v1335_v39, %v3698_v17  ;;  %v1372_v27 = vmul.f32 %v1371_v44, %v3816_v13  ;;  %v1124_v62 = vpop.f32.mrf.mxu2 }
 0x246   :  { %v1352_v52 = vmul.f32 %v3872_v12, %v3826_v5  ;;  %v1552_v42 = vmul.f32 %v3865_v41, %v3806_v35  ;;  %v1571_v18 = vadd.f32 0.00028619796, %v1570_v22  ;;  %v1588_v16 = vadd.f32 0.4994258, %v1587_v36 }
 0x247   :  { %v1384_v8 = vadd.f32 0.014752088, %v1383_v54  ;;  %v3882_v43 = vmul.f32 %v1524_v31, %v1500_v57  ;;  %v3886_v61 = vmul.f32 %v3859_v25, %v3801_v28  ;;  %v1610_v14 = vmul.f32 2.1237322e-06, %v3870_v53 }
 0x248   :  { %v1621_v26 = vmul.f32 3.8918573e-05, %v3870_v53  ;;  %v1325_v23 = vmul.f32 %v1324_v46, %v1300_v4  ;;  %v1353_v9 = vsub.f32 1.0, %v1352_v52  ;;  %v1589_v39 = vmul.f32 %v1588_v16, %v3776_v29 }
 0x249   :  { %v1385_v44 = vmul.f32 %v1384_v8, %v3816_v13  ;;  %v3893_v50 = vadd.f32 %v3701_v34, %v1938_v24  ;;  %v1538_v57 = vmul.f32 %v1537_v47, %v3657_v2  ;;  %v1373_v22 = vadd.f32 0.0036580483, %v1372_v27 }
 0x24a   :  { %v1622_v31 = vadd.f32 0.001143296, %v1621_v26  ;;  %v1553_v36 = vsub.f32 1.0, %v1552_v42  ;;  %v1337_v54 = vadd.f32 0.18741608, %v1336_v56  ;;  %v1572_v0 = vmul.f32 %v1571_v18, %v3776_v29 }
 0x24b   :  { %v1386_v38 = vadd.f32 0.112945676, %v1385_v44  ;;  %v1793_v4 = vsub.f32 1.0, %v3886_v61  ;;  %v3898_v46 = vadd.f32 1.0, %v1589_v39  ;;  %v1611_v52 = vadd.f32 0.00028619796, %v1610_v14 }
 0x24c   :  { %v1623_v16 = vmul.f32 %v1622_v31, %v3870_v53  ;;  %v2026_v34 = vclamps-f32 %v3882_v43, 1.0  ;;  %v2021_v24 = vclamps-f32 %v1325_v23, 1.0  ;;  %v1354_v2 = vmul.f32 %v3872_v12, %v1353_v9 }
 0x24d   :  { %v3904_v47 = vadd.f32 %v1124_v62, %v3482_v37  ;;  %v1539_v27 = vadd.f32 1.1283791, %v1538_v57  ;;  %vm1556_vm6 = vweird.f32 %v3806_v35  ;;  %v1374_v56 = vmul.f32 %v1373_v22, %v3816_v13 }
 0x24e   :  { %v1387_v42 = vmul.f32 %v1386_v38, %v3816_v13  ;;  %v1554_v18 = vmul.f32 %v3865_v41, %v1553_v36  ;;  %v1560_v8 = vand.u32 2147483647, %v3806_v35  ;;  %v1338_v14 = vmul.f32 %v1337_v54, %v3698_v17 }
 0x24f   :  { %v1573_v26 = vadd.f32 0.0036580483, %v1572_v0  ;;  %2127 = vrcp.f32 %v3898_v46  ;;  %v1612_v37 = vmul.f32 %v1611_v52, %v3870_v53  ;;  %v1624_v9 = vadd.f32 0.014752088, %v1623_v16 }
 0x250   :  { %v1388_v23 = vadd.f32 0.4994258, %v1387_v42  ;;  %v1811_v39 = vadd.f32 1.0, %v2021_v24  ;;  %v1355_v44 = vadd.f32 %v3872_v12, %v1354_v2  ;;  %vm1357_vm7 = vweird.f32 %v3872_v12 }
 0x251   :  { %v3917_v38 = vmul.f32 0.70710677, %v3904_v47  ;;  %v1362_v57 = vand.u32 2147483648, %v3826_v5  ;;  %v1375_v22 = vadd.f32 0.05243302, %v1374_v56  ;;  %v1625_v0 = vmul.f32 %v1624_v9, %v3870_v53 }
 0x252   :  { %v1389_v17 = vmul.f32 %v1388_v23, %v3816_v13  ;;  %vm1356_vm0 = vweird.f32 %v3826_v5  ;;  %v1360_v31 = vand.u32 2147483647, %v3826_v5  ;;  %v1574_v62 = vmul.f32 %v1573_v26, %v3776_v29 }
 0x253   :  { %v1648_v36 = vmul.f32 %v3917_v38, %v3917_v38  ;;  %v1555_v54 = vadd.f32 %v3865_v41, %v1554_v18  ;;  %vm1557_vm4 = vweird.f32 %v3865_v41  ;;  %v1339_v52 = vadd.f32 1.1283791, %v1338_v14  ;;  %vm3929_vm5 = vmor %vm1356_vm0, %vm1357_vm7 }
 0x254   :  { %v1613_v24 = vadd.f32 0.0036580483, %v1612_v37  ;;  %v1359_v2 = vsel %vm3929_vm5, %v3872_v12, %v1355_v44  ;;  %v3936_v5 = vadd.f32 1.0, %v1389_v17  ;;  %v1626_v56 = vadd.f32 0.112945676, %v1625_v0  ;;  %vm3947_vm11 = vmor %vm1556_vm6, %vm1557_vm4 }
 0x255   :  { %v3938_v42 = vmin.f32 %v1648_v36, 16.0  ;;  %v3940_v26 = vpop.eup %2127  ;;  %v1827_v18 = vmul.f32 %v1811_v39, %v3705_v6  ;;  %v1562_v14 = vand.u32 2147483648, %v3806_v35  ;;  %v1363_v23 = vor.u32 1.1754944e-38, %v1362_v57 }
 0x256   :  { %v1376_v9 = vmul.f32 %v1375_v22, %v3816_v13  ;;  %vm3951_vm1 = vcmp.eq.f32.partialorder %v1560_v8, 8.507059e+37  ;;  %vm1361_vm9 = vcmp.eq.f32.partialorder %v1360_v31, 8.507059e+37  ;;  %v1575_v44 = vadd.f32 0.05243302, %v1574_v62 }
 0x257   :  { %2129 = vrcp.f32 %v3936_v5  ;;  %v1559_v6 = vsel %vm3947_vm11, %v3865_v41, %v1555_v54  ;;  %v1340_v39 = vmul.f32 %v1339_v52, %v3671_v60  ;;  %v1364_v57 = vsel %vm1361_vm9, %v1363_v23, %v1359_v2 }
 0x258   :  { %v1627_v35 = vmul.f32 %v1626_v56, %v3870_v53  ;;  %v1592_v22 = vmul.f32 %v3940_v26, %v3898_v46  ;;  %v1614_v8 = vmul.f32 %v1613_v24, %v3870_v53  ;;  %v1650_v17 = vmul.f32 2.1237322e-06, %v3938_v42 }
 0x259   :  { %v1661_v0 = vmul.f32 3.8918573e-05, %v3938_v42  ;;  %v1939_v31 = vmul.f32 %v3576_v51, %v1827_v18  ;;  %v1563_v62 = vor.u32 1.1754944e-38, %v1562_v14  ;;  %v1377_v36 = vadd.f32 0.18741608, %v1376_v9 }
 0x25a   :  { %v1628_v16 = vadd.f32 0.4994258, %v1627_v35  ;;  %v1365_v41 = vmul.f32 %v1364_v57, %v1340_v39  ;;  %v1576_v60 = vmul.f32 %v1575_v44, %v3776_v29  ;;  %v1651_v54 = vadd.f32 0.00028619796, %v1650_v17 }
 0x25b   :  { %v1662_v52 = vadd.f32 0.001143296, %v1661_v0  ;;  %v3971_v2 = vmul.f32 %v3859_v25, %v1793_v4  ;;  %v1540_v24 = vmul.f32 %v1539_v27, %v3627_v33  ;;  %v1564_v56 = vsel %vm3951_vm1, %v1563_v62, %v1559_v6 }
 0x25c   :  { %v1629_v51 = vmul.f32 %v1628_v16, %v3870_v53  ;;  %v1593_v14 = vsub.f32 1.0, %v1592_v22  ;;  %v1615_v23 = vadd.f32 0.05243302, %v1614_v8  ;;  %v1652_v9 = vmul.f32 %v1651_v54, %v3938_v42 }
 0x25d   :  { %v2130_v18 = vpop.eup %2129  ;;  %v1663_v37 = vmul.f32 %v1662_v52, %v3938_v42  ;;  %v3980_v44 = vmul.f32 0.5, %v3761_v1  ;;  %v1378_v61 = vmul.f32 %v1377_v36, %v3816_v13  ;;  %v3987_v27 = vadd.f32 %v3893_v50, %v1939_v31 }
 0x25e   :  { %v1392_v4 = vmul.f32 %v2130_v18, %v3936_v5  ;;  %v3984_v33 = vadd.f32 1.0, %v1629_v51  ;;  %v2022_v12 = vclamps-f32 %v1365_v41, 1.0  ;;  %v1577_v6 = vadd.f32 0.18741608, %v1576_v60 }
 0x25f   :  { %v1664_v39 = vadd.f32 0.014752088, %v1663_v37  ;;  %v3989_v57 = vmul.f32 %v1564_v56, %v1540_v24  ;;  %v1653_v22 = vadd.f32 0.0036580483, %v1652_v9  ;;  %v1594_v1 = vmul.f32 %v3940_v26, %v1593_v14 }
 0x260   :  { %v1393_v35 = vsub.f32 1.0, %v1392_v4  ;;  %2131 = vrcp.f32 %v3984_v33  ;;  %v1402_v13 = vand.u32 2147483648, %v3936_v5  ;;  %v1616_v8 = vmul.f32 %v1615_v23, %v3870_v53 }
 0x261   :  { %v1665_v17 = vmul.f32 %v1664_v39, %v3938_v42  ;;  %v1379_v0 = vadd.f32 1.1283791, %v1378_v61  ;;  %vm1397_vm3 = vweird.f32 %v2130_v18  ;;  %v1400_v31 = vand.u32 2147483647, %v3936_v5 }
 0x262   :  { %v1394_v50 = vmul.f32 %v2130_v18, %v1393_v35  ;;  %v1812_v62 = vadd.f32 1.0, %v2022_v12  ;;  %v1578_v36 = vmul.f32 %v1577_v6, %v3776_v29  ;;  %v1600_v16 = vand.u32 2147483647, %v3898_v46 }
 0x263   :  { %v1666_v41 = vadd.f32 0.112945676, %v1665_v17  ;;  %vm1597_vm8 = vweird.f32 %v3940_v26  ;;  %vm1396_vm14 = vweird.f32 %v3936_v5  ;;  %v1654_v54 = vmul.f32 %v1653_v22, %v3938_v42 }
 0x264   :  { %v1395_v60 = vadd.f32 %v2130_v18, %v1394_v50  ;;  %v1595_v52 = vadd.f32 %v3940_v26, %v1594_v1  ;;  %vm1398_vm12 = vmor %vm1396_vm14, %vm1397_vm3  ;;  %v1403_v24 = vor.u32 1.1754944e-38, %v1402_v13  ;;  %v1617_v56 = vadd.f32 0.18741608, %v1616_v8 }
 0x265   :  { %v1667_v51 = vmul.f32 %v1666_v41, %v3938_v42  ;;  %v1602_v29 = vand.u32 2147483648, %v3898_v46  ;;  %v1380_v23 = vmul.f32 %v1379_v0, %v3789_v40  ;;  %vm1401_vm15 = vcmp.eq.f32.partialorder %v1400_v31, 8.507059e+37  ;;  %v1879_v40 = vpop.permute.xlu0 %1878  ;;  %v1884_v31 = vpop.permute.xlu1 %1883 }
 0x266   :  { %v2132_v14 = vpop.eup %2131  ;;  %v1399_v9 = vsel %vm1398_vm12, %v2130_v18, %v1395_v60  ;;  %v1828_v37 = vmul.f32 %v1812_v62, %v3820_v10  ;;  %vm1596_vm10 = vweird.f32 %v3898_v46  ;;  %v1579_v4 = vadd.f32 1.1283791, %v1578_v36 }
 0x267   :  { %v1404_v5 = vsel %vm1401_vm15, %v1403_v24, %v1399_v9  ;;  %v1632_v61 = vmul.f32 %v2132_v14, %v3984_v33  ;;  %vm4011_vm13 = vmor %vm1596_vm10, %vm1597_vm8  ;;  %v1655_v39 = vadd.f32 0.05243302, %v1654_v54  ;;  %v1668_v35 = vadd.f32 0.4994258, %v1667_v51 }
 0x268   :  { %v1405_v6 = vmul.f32 %v1404_v5, %v1380_v23  ;;  %v1599_v10 = vsel %vm4011_vm13, %v3940_v26, %v1595_v52  ;;  %vm1601_vm6 = vcmp.eq.f32.partialorder %v1600_v16, 8.507059e+37  ;;  %v1618_v46 = vmul.f32 %v1617_v56, %v3870_v53 }
 0x269   :  { %v1633_v18 = vsub.f32 1.0, %v1632_v61  ;;  %v1603_v22 = vor.u32 1.1754944e-38, %v1602_v29  ;;  %v1642_v13 = vand.u32 2147483648, %v3984_v33  ;;  %v1669_v8 = vmul.f32 %v1668_v35, %v3938_v42 }
 0x26a   :  { %v2023_v1 = vclamps-f32 %v1405_v6, 1.0  ;;  %v1940_v17 = vmul.f32 %v1879_v40, %v1828_v37  ;;  %vm1637_vm7 = vweird.f32 %v2132_v14  ;;  %v1640_v50 = vand.u32 2147483647, %v3984_v33 }
 0x26b   :  { %v1634_v0 = vmul.f32 %v2132_v14, %v1633_v18  ;;  %v4255_v62 = vand.u32 2147483647, %v3599_v48  ;;  %v1604_v53 = vsel %vm1601_vm6, %v1603_v22, %v1599_v10  ;;  %v1656_v16 = vmul.f32 %v1655_v39, %v3938_v42 }
 0x26c   :  { %v1813_v36 = vadd.f32 1.0, %v2023_v1  ;;  %v4029_v41 = vadd.f32 1.0, %v1669_v8  ;;  %v1580_v60 = vmul.f32 %v1579_v4, %v3742_v11  ;;  %v1619_v54 = vadd.f32 1.1283791, %v1618_v46 }
 0x26d   :  { %vm4024_vm0 = vcmp.eq.f32.partialorder %v4255_v62, 8.507059e+37  ;;  %v1635_v52 = vadd.f32 %v2132_v14, %v1634_v0  ;;  %vm1636_vm4 = vweird.f32 %v3984_v33  ;;  %v2027_v24 = vclamps-f32 %v3989_v57, 1.0  ;;  %v1899_v10 = vpop.permute.xlu1 %1898 }
 0x26e   :  { %v1829_v48 = vmul.f32 %v1813_v36, %v3980_v44  ;;  %vm1638_vm5 = vmor %vm1636_vm4, %vm1637_vm7  ;;  %v1643_v56 = vor.u32 1.1754944e-38, %v1642_v13  ;;  %2133 = vrcp.f32 %v4029_v41  ;;  %v1816_v51 = vadd.f32 1.0, %v2026_v34 }
 0x26f   :  { %v1605_v29 = vmul.f32 %v1604_v53, %v1580_v60  ;;  %v1639_v23 = vsel %vm1638_vm5, %v2132_v14, %v1635_v52  ;;  %vm1641_vm11 = vcmp.eq.f32.partialorder %v1640_v50, 8.507059e+37  ;;  %v1955_v11 = vadd.f32 %v3987_v27, %v1940_v17  ;;  %v1894_v27 = vpop.permute.xlu0 %1893 }
 0x270   :  { %v1941_v9 = vmul.f32 %v1884_v31, %v1829_v48  ;;  %v1644_v37 = vsel %vm1641_vm11, %v1643_v56, %v1639_v23  ;;  %v1657_v5 = vadd.f32 0.18741608, %v1656_v16  ;;  %v1778_v33 = vmul.f32 %v3782_v32, %v3597_v3  ;;  %v4261_v16 = vld [vmem:[#allocation14_spill] sm:$0xff] }
 0x271   :  { %v1795_v44 = vadd.f32 %v3859_v25, %v3971_v2  ;;  %vm1797_vm1 = vweird.f32 %v3859_v25  ;;  %v1620_v57 = vmul.f32 %v1619_v54, %v3823_v49  ;;  %v1800_v43 = vand.u32 2147483647, %v3801_v28  ;;  %v4262_v54 = vld [vmem:[#allocation23_spill] sm:$0xff] }
 0x272   :  { %v1802_v34 = vand.u32 2147483648, %v3801_v28  ;;  %v1817_v14 = vadd.f32 1.0, %v2027_v24  ;;  %v1956_v61 = vadd.f32 %v1955_v11, %v1941_v9  ;;  %v1832_v4 = vmul.f32 %v1816_v51, %v3624_v59 }
 0x273   :  { %vm1796_vm9 = vweird.f32 %v3801_v28  ;;  %v2028_v12 = vclamps-f32 %v1605_v29, 1.0  ;;  %v1645_v3 = vmul.f32 %v1644_v37, %v1620_v57  ;;  %v1943_v2 = vmul.f32 %v1894_v27, %v3764_v55 }
 0x274   :  { %v2134_v32 = vpop.eup %2133  ;;  %vm4050_vm3 = vmor %vm1796_vm9, %vm1797_vm1  ;;  %v1145_v49 = vmul.f32 0.5, %v3607_v19  ;;  %v1957_v39 = vadd.f32 %v1956_v61, %v3631_v21  ;;  %v1658_v35 = vmul.f32 %v1657_v5, %v3938_v42  ;;  %v4260_v59 = vsel %vm3770_vm2, %v3651_v63, %v3745_v58  ;;  %v1904_v58 = vpop.permute.xlu2 %1903 }
 0x275   :  { %v1764_v28 = vsel %vm4024_vm0, %v3691_v20, %v4260_v59  ;;  %v1779_v55 = vadd.f32 1.1283791, %v1778_v33  ;;  %v1799_v40 = vsel %vm4050_vm3, %v3859_v25, %v1795_v44  ;;  %v1672_v19 = vmul.f32 %v2134_v32, %v4029_v41  ;;  %v1914_v37 = vpop.permute.xlu1 %1913 }
 0x276   :  { %vm1801_vm8 = vcmp.eq.f32.partialorder %v1800_v43, 8.507059e+37  ;;  %v1803_v21 = vor.u32 1.1754944e-38, %v1802_v34  ;;  %v1833_v42 = vmul.f32 %v1817_v14, %v1145_v49  ;;  %v1958_v46 = vadd.f32 %v1957_v39, %v1943_v2  ;;  %v4263_v43 = vld [vmem:[#allocation20_spill] sm:$0xff] }
 0x277   :  { %v1944_v7 = vmul.f32 %v1899_v10, %v1832_v4  ;;  %v1818_v18 = vadd.f32 1.0, %v2028_v12  ;;  %v2029_v22 = vclamps-f32 %v1645_v3, 1.0  ;;  %v1673_v63 = vsub.f32 1.0, %v1672_v19  ;;  %v4264_v4 = vld [vmem:[#allocation12_spill] sm:$0xff] }
 0x278   :  { %v1804_v1 = vsel %vm1801_vm8, %v1803_v21, %v1799_v40  ;;  %v1146_v20 = vmul.f32 0.5, %v3720_v45  ;;  %v1659_v13 = vadd.f32 1.1283791, %v1658_v35  ;;  %v1682_v8 = vand.u32 2147483648, %v4029_v41  ;;  %v4265_v39 = vld [vmem:[#allocation24_spill] sm:$0xff] }
 0x279   :  { %v1959_v17 = vadd.f32 %v1958_v46, %v1944_v7  ;;  %v1674_v25 = vmul.f32 %v2134_v32, %v1673_v63  ;;  %vm1677_vm2 = vweird.f32 %v2134_v32  ;;  %v1680_v0 = vand.u32 2147483647, %v4029_v41 }
 0x27a   :  { %v1765_v50 = vmul.f32 %v1764_v28, %v3663_v15  ;;  %v1780_v31 = vmul.f32 %v1779_v55, %v3551_v30  ;;  %v1945_v62 = vmul.f32 %v1904_v58, %v1833_v42  ;;  %v1834_v26 = vmul.f32 %v1818_v18, %v1146_v20  ;;  %v1909_v15 = vpop.permute.xlu0 %1908 }
 0x27b   :  { %v1819_v53 = vadd.f32 1.0, %v2029_v22  ;;  %v1675_v36 = vadd.f32 %v2134_v32, %v1674_v25  ;;  %vm1676_vm14 = vweird.f32 %v4029_v41  ;;  %v2031_v45 = vclamps-f32 %v4261_v16, 1.0 }
 0x27c   :  { %v1805_v60 = vmul.f32 %v1804_v1, %v1780_v31  ;;  %v1147_v52 = vmul.f32 0.5, %v4262_v54  ;;  %vm1678_vm12 = vmor %vm1676_vm14, %vm1677_vm2  ;;  %v1683_v24 = vor.u32 1.1754944e-38, %v1682_v8  ;;  %v1960_v48 = vadd.f32 %v1959_v17, %v1945_v62  ;;  %v1919_v57 = vpop.permute.xlu2 %1918 }
 0x27d   :  { %v1660_v56 = vmul.f32 %v1659_v13, %v3917_v38  ;;  %v1679_v51 = vsel %vm1678_vm12, %v2134_v32, %v1675_v36  ;;  %vm1681_vm15 = vcmp.eq.f32.partialorder %v1680_v0, 8.507059e+37  ;;  %v2032_v29 = vclamps-f32 %v1765_v50, 1.0  ;;  %v1929_v10 = vpop.permute.xlu1 %1928 }
 0x27e   :  { %v1684_v30 = vsel %vm1681_vm15, %v1683_v24, %v1679_v51  ;;  %v1946_v23 = vmul.f32 %v1909_v15, %v1834_v26  ;;  %v1835_v11 = vmul.f32 %v1819_v53, %v1147_v52  ;;  %v1821_v41 = vadd.f32 1.0, %v2031_v45 }
 0x27f   :  { %v1685_v9 = vmul.f32 %v1684_v30, %v1660_v56  ;;  %v2033_v5 = vclamps-f32 %v1805_v60, 1.0  ;;  %v1149_v34 = vmul.f32 0.5, %v4263_v43  ;;  %v1822_v14 = vadd.f32 1.0, %v2032_v29 }
 0x280   :  { %v1961_v33 = vadd.f32 %v1960_v48, %v1946_v23  ;;  %v1947_v61 = vmul.f32 %v1914_v37, %v1835_v11  ;;  %v1148_v38 = vmul.f32 0.5, %v3904_v47  ;;  %v1150_v12 = vmul.f32 0.5, %v4264_v4 }
 0x281   :  { %v2030_v44 = vclamps-f32 %v1685_v9, 1.0  ;;  %v1837_v3 = vmul.f32 %v1821_v41, %v1149_v34  ;;  %v1823_v32 = vadd.f32 1.0, %v2033_v5  ;;  %v1151_v35 = vmul.f32 0.5, %v4265_v39 }
 0x282   :  { %v1962_v2 = vadd.f32 %v1961_v33, %v1947_v61  ;;  %v1838_v49 = vmul.f32 %v1822_v14, %v1150_v12  ;;  %v1924_v28 = vpop.permute.xlu0 %1923 }
 0x283   :  { %v1820_v27 = vadd.f32 1.0, %v2030_v44  ;;  %v1949_v55 = vmul.f32 %v1924_v28, %v1837_v3  ;;  %v1839_v40 = vmul.f32 %v1823_v32, %v1151_v35 }
 0x284   :  { %v1950_v21 = vmul.f32 %v1929_v10, %v1838_v49  ;;  %v1934_v46 = vpop.permute.xlu2 %1933 }
 0x285   :  { %v1836_v6 = vmul.f32 %v1820_v27, %v1148_v38  ;;  %v1951_v47 = vmul.f32 %v1934_v46, %v1839_v40 }
 0x287   :  { %v1948_v59 = vmul.f32 %v1919_v57, %v1836_v6 }
 0x289   :  { %v1963_v19 = vadd.f32 %v1962_v2, %v1948_v59 }
 0x28a   :  { %v1977_v20 = vpop.permute.xlu0 %1976 }
 0x28b   :  { %v1964_v42 = vadd.f32 %v1963_v19, %v1949_v55  ;;  %v1979_v8 = vperm.slane %v1977_v20, 0 }
 0x28d   :  { %v1965_v7 = vadd.f32 %v1964_v42, %v1950_v21 }
 0x28f   :  { %v1966_v18 = vadd.f32 %v1965_v7, %v1951_v47 }
 0x291   :  { %v1967_v22 = vrot.slane %v1966_v18, 4 }
 0x293   :  { %v1968_v63 = vadd.f32 %v1967_v22, %v1966_v18 }
 0x295   :  { %v1969_v58 = vrot.slane %v1968_v63, 2 }
 0x297   :  { %v1970_v1 = vadd.f32 %v1969_v58, %v1968_v63 }
 0x299   :  { %v1971_v13 = vrot.slane %v1970_v1, 1 }
 0x29b   :  { %v1972_v17 = vadd.f32 %v1971_v13, %v1970_v1 }
 0x29d   :  { %v1980_v25 = vadd.f32 %v1979_v8, %v1972_v17 }
 0x29f   :  { %1981 = vst [vmem:[%s4092_s7] sm:$0x1] %v1980_v25 }

</bundles_post_ra>
